<compile_context>
chip_gen: v7x
topology: tpu7x:2x2x1
jax: 0.10.0
libtpu: 0.0.40
codegen_flags: <defaults>
</compile_context>

<pallas_src>
import jax
import jax.numpy as jnp
from jax.experimental import pallas as pl
from jax.experimental.pallas import tpu as pltpu

_LANE = 128
_NF = 5        # real number of filters
_NF_PAD = 8    # padded to a full sublane tile


def _round_up(x, m):
    return (x + m - 1) // m * m


def _make_conv_kernel(kh, kw, ho, wo, p_pad):
    """Kernel: one frame per grid step; in-kernel im2col + one MXU GEMM."""
    p = ho * wo

    def kernel(w_ref, f_ref, out_ref, cols_ref):
        # cols_ref: (KK, P_pad) VMEM scratch, KK = kh*kw, with
        #   cols[kj*kh + ki, r*wo + j] = frame[r + ki, j + kj]
        if p_pad != p:
            # Zero the pad lanes (they feed the GEMM; padded output columns
            # are sliced off in the wrapper).  Cheap: one (KK, P_pad) fill.
            cols_ref[...] = jnp.zeros_like(cols_ref)

        # In-kernel im2col: HO*KW contiguous (KH, WO) slab copies.  All
        # indices are static; each copy is a strided VMEM load + store -
        # no reshape / transpose / gather inside the kernel.
        for r in range(ho):
            for kj in range(kw):
                cols_ref[kj * kh:(kj + 1) * kh, r * wo:r * wo + wo] = (
                    f_ref[0, r:r + kh, kj:kj + wo])

        # Single MXU GEMM for the whole frame: (NF_PAD, KK) @ (KK, P_pad).
        out_ref[0] = jnp.dot(
            w_ref[...],
            cols_ref[...],
            preferred_element_type=jnp.float32,
            precision=jax.lax.Precision.HIGHEST,
        )

    return kernel


def conv2d_valid(frames_nhw, weights):
    """VALID cross-correlation (== F.conv2d, single in-channel).

    frames_nhw: (N, H, W) f32
    weights:    (NF, KH, KW) f32
    returns:    (N, NF, HO, WO) f32  (torch conv2d output layout)
    """
    n, h, w = frames_nhw.shape
    nf, kh, kw = weights.shape
    ho, wo = h - kh + 1, w - kw + 1
    kk = kh * kw
    p = ho * wo
    p_pad = _round_up(p, _LANE)

    # Pad filters to 8 rows (full sublane tile) and reorder taps to
    # kk = kj*KH + ki so the in-kernel im2col writes contiguous (KH, WO)
    # slabs.  Weight prep is tiny and stays in XLA.
    w_pad = jnp.zeros((_NF_PAD, kh, kw), jnp.float32)
    w_pad = w_pad.at[:nf].set(weights.astype(jnp.float32))
    w_flat = w_pad.transpose(0, 2, 1).reshape(_NF_PAD, kk)   # [f, kj*KH+ki]

    kernel = _make_conv_kernel(kh, kw, ho, wo, p_pad)

    out = pl.pallas_call(
        kernel,
        out_shape=jax.ShapeDtypeStruct((n, _NF_PAD, p_pad), jnp.float32),
        grid_spec=pltpu.PrefetchScalarGridSpec(
            num_scalar_prefetch=0,
            grid=(n,),
            in_specs=[
                pl.BlockSpec((_NF_PAD, kk), lambda i: (0, 0)),   # filters
                pl.BlockSpec((1, h, w), lambda i: (i, 0, 0)),    # raw frame
            ],
            out_specs=pl.BlockSpec((1, _NF_PAD, p_pad), lambda i: (i, 0, 0)),
            scratch_shapes=[pltpu.VMEM((kk, p_pad), jnp.float32)],
        ),
        compiler_params=pltpu.CompilerParams(
            dimension_semantics=("parallel",)),
    )(w_flat, frames_nhw.astype(jnp.float32))

    # Drop the 3 dead filters and the pad lanes; restore torch layout.
    out = out[:, :nf, :p].reshape(n, nf, ho, wo)
    return out


def detector_forward(frame1, frame2, target, train=True):
    """Mirror of Detector.forward.

    frame1, frame2: (B, T, 1, H, W) f32
    target:         (1, 1, 1, KH, KW) f32
    Returns (f1_features, f2_features) as flattened 1-D arrays
    (f1_features is None when train=False), matching torch.flatten order.
    """
    b, t, c, h, w = frame2.shape
    kh, kw = target.shape[3], target.shape[4]
    targ = target.reshape(kh, kw).astype(jnp.float32)

    # torch weights[i, 0, :, :]; the singleton in-channel axis is dropped.
    weights = jnp.stack(
        [
            targ,
            jnp.roll(targ, shift=(3, 0), axis=(0, 1)),
            jnp.roll(targ, shift=(-3, 0), axis=(0, 1)),
            jnp.roll(targ, shift=(0, 3), axis=(0, 1)),
            jnp.roll(targ, shift=(0, -3), axis=(0, 1)),
        ],
        axis=0,
    )  # (5, KH, KW)

    f2 = frame2.reshape(-1, c, h, w)[:, 0].astype(jnp.float32)   # (N2, H, W)

    if train:
        f1 = frame1.reshape(-1, c, h, w)[:, 0].astype(jnp.float32)
        n1 = f1.shape[0]
        fused = jnp.concatenate([f1, f2], axis=0)       # one pallas_call total
        feats = conv2d_valid(fused, weights)            # (N1+N2, 5, HO, WO)
        f1_features = feats[:n1].reshape(-1)
        f2_features = feats[n1:].reshape(-1)
    else:
        f1_features = None
        f2_features = conv2d_valid(f2, weights).reshape(-1)

    # TODO(synk): predict()/train_feat() rely on sklearn (PCA/DBSCAN/KNN),
    # matplotlib and pickled checkpoints; they are outside the forward hot
    # path and not ported.
    return f1_features, f2_features


if __name__ == "__main__":
    key = jax.random.PRNGKey(0)
    k1, k2, k3 = jax.random.split(key, 3)

    B, T, C, H, W = 2, 2, 1, 16, 16
    KH, KW = 8, 8

    frame1 = jax.random.normal(k1, (B, T, C, H, W), dtype=jnp.float32)
    frame2 = jax.random.normal(k2, (B, T, C, H, W), dtype=jnp.float32)
    target = jax.random.normal(k3, (1, 1, 1, KH, KW), dtype=jnp.float32)

    f1_feat, f2_feat = detector_forward(frame1, frame2, target, train=True)
    jax.block_until_ready((f1_feat, f2_feat))

    # Cross-check against XLA's conv (pure-JAX reference of F.conv2d semantics).
    targ = target.reshape(KH, KW)
    w_oihw = jnp.stack(
        [
            targ,
            jnp.roll(targ, shift=(3, 0), axis=(0, 1)),
            jnp.roll(targ, shift=(-3, 0), axis=(0, 1)),
            jnp.roll(targ, shift=(0, 3), axis=(0, 1)),
            jnp.roll(targ, shift=(0, -3), axis=(0, 1)),
        ],
        axis=0,
    )[:, None, :, :]  # (5, 1, KH, KW) == torch OIHW layout

    def ref_conv(frames5d):
        f = frames5d.reshape(-1, C, H, W)
        out = jax.lax.conv_general_dilated(
            f, w_oihw, window_strides=(1, 1), padding="VALID",
            dimension_numbers=("NCHW", "OIHW", "NCHW"),
            precision=jax.lax.Precision.HIGHEST)
        return out.reshape(-1)

    assert jnp.allclose(f1_feat, ref_conv(frame1), atol=2e-3, rtol=2e-3)
    assert jnp.allclose(f2_feat, ref_conv(frame2), atol=2e-3, rtol=2e-3)

    # Eval path (train=False): f1 is None, single-frame-set conv only.
    f1_none, f2_only = detector_forward(frame1, frame2, target, train=False)
    jax.block_until_ready(f2_only)
    assert f1_none is None
    assert jnp.allclose(f2_only, ref_conv(frame2), atol=2e-3, rtol=2e-3)

    print("KERNEL_OK")
</pallas_src>

<mosaic_0001>
module attributes {stable_mosaic.version = 11 : i64} {
  func.func @kernel(%arg0: i32, %arg1: memref<8x64xf32, #tpu.memory_space<vmem>>, %arg2: memref<1x16x16xf32, #tpu.memory_space<vmem>>, %arg3: memref<1x8x128xf32, #tpu.memory_space<vmem>>, %arg4: memref<64x128xf32, #tpu.memory_space<vmem>>) attributes {dimension_semantics = [#tpu.dimension_semantics<parallel>], iteration_bounds = array<i64: 8>, scalar_prefetch = 0 : i64, scratch_operands = 1 : i64, tpu.core_type = #tpu.core_type<tc>, window_params = [{pipeline_mode = #tpu.pipeline_mode<synchronous>, transform_indices = @transform_0, window_bounds = array<i64: 8, 64>}, {transform_indices = @transform_1, window_bounds = array<i64: 1, 16, 16>}, {transform_indices = @transform_2, window_bounds = array<i64: 1, 8, 128>}]} {
    %cst = arith.constant 0.000000e+00 : f32
    %0 = vector.broadcast %cst : f32 to vector<64x128xf32>
    %c0 = arith.constant 0 : index
    %c0_0 = arith.constant 0 : index
    %1 = vector.load %arg4[%c0, %c0_0] : memref<64x128xf32, #tpu.memory_space<vmem>>, vector<64x128xf32>
    tpu.vector_store %arg4[%c0, %c0_0], %0 {strides = array<i32>} : memref<64x128xf32, #tpu.memory_space<vmem>>, vector<64x128xf32>,
    %c0_1 = arith.constant 0 : index
    %c0_2 = arith.constant 0 : index
    %c0_3 = arith.constant 0 : index
    %2 = vector.load %arg2[%c0_1, %c0_2, %c0_3] : memref<1x16x16xf32, #tpu.memory_space<vmem>>, vector<1x8x9xf32>
    %3 = vector.shape_cast %2 : vector<1x8x9xf32> to vector<8x9xf32>
    %c0_4 = arith.constant 0 : index
    %c0_5 = arith.constant 0 : index
    %4 = vector.load %arg4[%c0_4, %c0_5] : memref<64x128xf32, #tpu.memory_space<vmem>>, vector<8x9xf32>
    tpu.vector_store %arg4[%c0_4, %c0_5], %3 {strides = array<i32>} : memref<64x128xf32, #tpu.memory_space<vmem>>, vector<8x9xf32>,
    %c0_6 = arith.constant 0 : index
    %c0_7 = arith.constant 0 : index
    %c1 = arith.constant 1 : index
    %5 = vector.load %arg2[%c0_6, %c0_7, %c1] : memref<1x16x16xf32, #tpu.memory_space<vmem>>, vector<1x8x9xf32>
    %6 = vector.shape_cast %5 : vector<1x8x9xf32> to vector<8x9xf32>
    %c8 = arith.constant 8 : index
    %c0_8 = arith.constant 0 : index
    %7 = vector.load %arg4[%c8, %c0_8] : memref<64x128xf32, #tpu.memory_space<vmem>>, vector<8x9xf32>
    tpu.vector_store %arg4[%c8, %c0_8], %6 {strides = array<i32>} : memref<64x128xf32, #tpu.memory_space<vmem>>, vector<8x9xf32>,
    %c0_9 = arith.constant 0 : index
    %c0_10 = arith.constant 0 : index
    %c2 = arith.constant 2 : index
    %8 = vector.load %arg2[%c0_9, %c0_10, %c2] : memref<1x16x16xf32, #tpu.memory_space<vmem>>, vector<1x8x9xf32>
    %9 = vector.shape_cast %8 : vector<1x8x9xf32> to vector<8x9xf32>
    %c16 = arith.constant 16 : index
    %c0_11 = arith.constant 0 : index
    %10 = vector.load %arg4[%c16, %c0_11] : memref<64x128xf32, #tpu.memory_space<vmem>>, vector<8x9xf32>
    tpu.vector_store %arg4[%c16, %c0_11], %9 {strides = array<i32>} : memref<64x128xf32, #tpu.memory_space<vmem>>, vector<8x9xf32>,
    %c0_12 = arith.constant 0 : index
    %c0_13 = arith.constant 0 : index
    %c3 = arith.constant 3 : index
    %11 = vector.load %arg2[%c0_12, %c0_13, %c3] : memref<1x16x16xf32, #tpu.memory_space<vmem>>, vector<1x8x9xf32>
    %12 = vector.shape_cast %11 : vector<1x8x9xf32> to vector<8x9xf32>
    %c24 = arith.constant 24 : index
    %c0_14 = arith.constant 0 : index
    %13 = vector.load %arg4[%c24, %c0_14] : memref<64x128xf32, #tpu.memory_space<vmem>>, vector<8x9xf32>
    tpu.vector_store %arg4[%c24, %c0_14], %12 {strides = array<i32>} : memref<64x128xf32, #tpu.memory_space<vmem>>, vector<8x9xf32>,
    %c0_15 = arith.constant 0 : index
    %c0_16 = arith.constant 0 : index
    %c4 = arith.constant 4 : index
    %14 = vector.load %arg2[%c0_15, %c0_16, %c4] : memref<1x16x16xf32, #tpu.memory_space<vmem>>, vector<1x8x9xf32>
    %15 = vector.shape_cast %14 : vector<1x8x9xf32> to vector<8x9xf32>
    %c32 = arith.constant 32 : index
    %c0_17 = arith.constant 0 : index
    %16 = vector.load %arg4[%c32, %c0_17] : memref<64x128xf32, #tpu.memory_space<vmem>>, vector<8x9xf32>
    tpu.vector_store %arg4[%c32, %c0_17], %15 {strides = array<i32>} : memref<64x128xf32, #tpu.memory_space<vmem>>, vector<8x9xf32>,
    %c0_18 = arith.constant 0 : index
    %c0_19 = arith.constant 0 : index
    %c5 = arith.constant 5 : index
    %17 = vector.load %arg2[%c0_18, %c0_19, %c5] : memref<1x16x16xf32, #tpu.memory_space<vmem>>, vector<1x8x9xf32>
    %18 = vector.shape_cast %17 : vector<1x8x9xf32> to vector<8x9xf32>
    %c40 = arith.constant 40 : index
    %c0_20 = arith.constant 0 : index
    %19 = vector.load %arg4[%c40, %c0_20] : memref<64x128xf32, #tpu.memory_space<vmem>>, vector<8x9xf32>
    tpu.vector_store %arg4[%c40, %c0_20], %18 {strides = array<i32>} : memref<64x128xf32, #tpu.memory_space<vmem>>, vector<8x9xf32>,
    %c0_21 = arith.constant 0 : index
    %c0_22 = arith.constant 0 : index
    %c6 = arith.constant 6 : index
    %20 = vector.load %arg2[%c0_21, %c0_22, %c6] : memref<1x16x16xf32, #tpu.memory_space<vmem>>, vector<1x8x9xf32>
    %21 = vector.shape_cast %20 : vector<1x8x9xf32> to vector<8x9xf32>
    %c48 = arith.constant 48 : index
    %c0_23 = arith.constant 0 : index
    %22 = vector.load %arg4[%c48, %c0_23] : memref<64x128xf32, #tpu.memory_space<vmem>>, vector<8x9xf32>
    tpu.vector_store %arg4[%c48, %c0_23], %21 {strides = array<i32>} : memref<64x128xf32, #tpu.memory_space<vmem>>, vector<8x9xf32>,
    %c0_24 = arith.constant 0 : index
    %c0_25 = arith.constant 0 : index
    %c7 = arith.constant 7 : index
    %23 = vector.load %arg2[%c0_24, %c0_25, %c7] : memref<1x16x16xf32, #tpu.memory_space<vmem>>, vector<1x8x9xf32>
    %24 = vector.shape_cast %23 : vector<1x8x9xf32> to vector<8x9xf32>
    %c56 = arith.constant 56 : index
    %c0_26 = arith.constant 0 : index
    %25 = vector.load %arg4[%c56, %c0_26] : memref<64x128xf32, #tpu.memory_space<vmem>>, vector<8x9xf32>
    tpu.vector_store %arg4[%c56, %c0_26], %24 {strides = array<i32>} : memref<64x128xf32, #tpu.memory_space<vmem>>, vector<8x9xf32>,
    %c0_27 = arith.constant 0 : index
    %c1_28 = arith.constant 1 : index
    %c0_29 = arith.constant 0 : index
    %26 = vector.load %arg2[%c0_27, %c1_28, %c0_29] : memref<1x16x16xf32, #tpu.memory_space<vmem>>, vector<1x8x9xf32>
    %27 = vector.shape_cast %26 : vector<1x8x9xf32> to vector<8x9xf32>
    %c0_30 = arith.constant 0 : index
    %c9 = arith.constant 9 : index
    %28 = vector.load %arg4[%c0_30, %c9] : memref<64x128xf32, #tpu.memory_space<vmem>>, vector<8x9xf32>
    tpu.vector_store %arg4[%c0_30, %c9], %27 {strides = array<i32>} : memref<64x128xf32, #tpu.memory_space<vmem>>, vector<8x9xf32>,
    %c0_31 = arith.constant 0 : index
    %c1_32 = arith.constant 1 : index
    %c1_33 = arith.constant 1 : index
    %29 = vector.load %arg2[%c0_31, %c1_32, %c1_33] : memref<1x16x16xf32, #tpu.memory_space<vmem>>, vector<1x8x9xf32>
    %30 = vector.shape_cast %29 : vector<1x8x9xf32> to vector<8x9xf32>
    %c8_34 = arith.constant 8 : index
    %c9_35 = arith.constant 9 : index
    %31 = vector.load %arg4[%c8_34, %c9_35] : memref<64x128xf32, #tpu.memory_space<vmem>>, vector<8x9xf32>
    tpu.vector_store %arg4[%c8_34, %c9_35], %30 {strides = array<i32>} : memref<64x128xf32, #tpu.memory_space<vmem>>, vector<8x9xf32>,
    %c0_36 = arith.constant 0 : index
    %c1_37 = arith.constant 1 : index
    %c2_38 = arith.constant 2 : index
    %32 = vector.load %arg2[%c0_36, %c1_37, %c2_38] : memref<1x16x16xf32, #tpu.memory_space<vmem>>, vector<1x8x9xf32>
    %33 = vector.shape_cast %32 : vector<1x8x9xf32> to vector<8x9xf32>
    %c16_39 = arith.constant 16 : index
    %c9_40 = arith.constant 9 : index
    %34 = vector.load %arg4[%c16_39, %c9_40] : memref<64x128xf32, #tpu.memory_space<vmem>>, vector<8x9xf32>
    tpu.vector_store %arg4[%c16_39, %c9_40], %33 {strides = array<i32>} : memref<64x128xf32, #tpu.memory_space<vmem>>, vector<8x9xf32>,
    %c0_41 = arith.constant 0 : index
    %c1_42 = arith.constant 1 : index
    %c3_43 = arith.constant 3 : index
    %35 = vector.load %arg2[%c0_41, %c1_42, %c3_43] : memref<1x16x16xf32, #tpu.memory_space<vmem>>, vector<1x8x9xf32>
    %36 = vector.shape_cast %35 : vector<1x8x9xf32> to vector<8x9xf32>
    %c24_44 = arith.constant 24 : index
    %c9_45 = arith.constant 9 : index
    %37 = vector.load %arg4[%c24_44, %c9_45] : memref<64x128xf32, #tpu.memory_space<vmem>>, vector<8x9xf32>
    tpu.vector_store %arg4[%c24_44, %c9_45], %36 {strides = array<i32>} : memref<64x128xf32, #tpu.memory_space<vmem>>, vector<8x9xf32>,
    %c0_46 = arith.constant 0 : index
    %c1_47 = arith.constant 1 : index
    %c4_48 = arith.constant 4 : index
    %38 = vector.load %arg2[%c0_46, %c1_47, %c4_48] : memref<1x16x16xf32, #tpu.memory_space<vmem>>, vector<1x8x9xf32>
    %39 = vector.shape_cast %38 : vector<1x8x9xf32> to vector<8x9xf32>
    %c32_49 = arith.constant 32 : index
    %c9_50 = arith.constant 9 : index
    %40 = vector.load %arg4[%c32_49, %c9_50] : memref<64x128xf32, #tpu.memory_space<vmem>>, vector<8x9xf32>
    tpu.vector_store %arg4[%c32_49, %c9_50], %39 {strides = array<i32>} : memref<64x128xf32, #tpu.memory_space<vmem>>, vector<8x9xf32>,
    %c0_51 = arith.constant 0 : index
    %c1_52 = arith.constant 1 : index
    %c5_53 = arith.constant 5 : index
    %41 = vector.load %arg2[%c0_51, %c1_52, %c5_53] : memref<1x16x16xf32, #tpu.memory_space<vmem>>, vector<1x8x9xf32>
    %42 = vector.shape_cast %41 : vector<1x8x9xf32> to vector<8x9xf32>
    %c40_54 = arith.constant 40 : index
    %c9_55 = arith.constant 9 : index
    %43 = vector.load %arg4[%c40_54, %c9_55] : memref<64x128xf32, #tpu.memory_space<vmem>>, vector<8x9xf32>
    tpu.vector_store %arg4[%c40_54, %c9_55], %42 {strides = array<i32>} : memref<64x128xf32, #tpu.memory_space<vmem>>, vector<8x9xf32>,
    %c0_56 = arith.constant 0 : index
    %c1_57 = arith.constant 1 : index
    %c6_58 = arith.constant 6 : index
    %44 = vector.load %arg2[%c0_56, %c1_57, %c6_58] : memref<1x16x16xf32, #tpu.memory_space<vmem>>, vector<1x8x9xf32>
    %45 = vector.shape_cast %44 : vector<1x8x9xf32> to vector<8x9xf32>
    %c48_59 = arith.constant 48 : index
    %c9_60 = arith.constant 9 : index
    %46 = vector.load %arg4[%c48_59, %c9_60] : memref<64x128xf32, #tpu.memory_space<vmem>>, vector<8x9xf32>
    tpu.vector_store %arg4[%c48_59, %c9_60], %45 {strides = array<i32>} : memref<64x128xf32, #tpu.memory_space<vmem>>, vector<8x9xf32>,
    %c0_61 = arith.constant 0 : index
    %c1_62 = arith.constant 1 : index
    %c7_63 = arith.constant 7 : index
    %47 = vector.load %arg2[%c0_61, %c1_62, %c7_63] : memref<1x16x16xf32, #tpu.memory_space<vmem>>, vector<1x8x9xf32>
    %48 = vector.shape_cast %47 : vector<1x8x9xf32> to vector<8x9xf32>
    %c56_64 = arith.constant 56 : index
    %c9_65 = arith.constant 9 : index
    %49 = vector.load %arg4[%c56_64, %c9_65] : memref<64x128xf32, #tpu.memory_space<vmem>>, vector<8x9xf32>
    tpu.vector_store %arg4[%c56_64, %c9_65], %48 {strides = array<i32>} : memref<64x128xf32, #tpu.memory_space<vmem>>, vector<8x9xf32>,
    %c0_66 = arith.constant 0 : index
    %c2_67 = arith.constant 2 : index
    %c0_68 = arith.constant 0 : index
    %50 = vector.load %arg2[%c0_66, %c2_67, %c0_68] : memref<1x16x16xf32, #tpu.memory_space<vmem>>, vector<1x8x9xf32>
    %51 = vector.shape_cast %50 : vector<1x8x9xf32> to vector<8x9xf32>
    %c0_69 = arith.constant 0 : index
    %c18 = arith.constant 18 : index
    %52 = vector.load %arg4[%c0_69, %c18] : memref<64x128xf32, #tpu.memory_space<vmem>>, vector<8x9xf32>
    tpu.vector_store %arg4[%c0_69, %c18], %51 {strides = array<i32>} : memref<64x128xf32, #tpu.memory_space<vmem>>, vector<8x9xf32>,
    %c0_70 = arith.constant 0 : index
    %c2_71 = arith.constant 2 : index
    %c1_72 = arith.constant 1 : index
    %53 = vector.load %arg2[%c0_70, %c2_71, %c1_72] : memref<1x16x16xf32, #tpu.memory_space<vmem>>, vector<1x8x9xf32>
    %54 = vector.shape_cast %53 : vector<1x8x9xf32> to vector<8x9xf32>
    %c8_73 = arith.constant 8 : index
    %c18_74 = arith.constant 18 : index
    %55 = vector.load %arg4[%c8_73, %c18_74] : memref<64x128xf32, #tpu.memory_space<vmem>>, vector<8x9xf32>
    tpu.vector_store %arg4[%c8_73, %c18_74], %54 {strides = array<i32>} : memref<64x128xf32, #tpu.memory_space<vmem>>, vector<8x9xf32>,
    %c0_75 = arith.constant 0 : index
    %c2_76 = arith.constant 2 : index
    %c2_77 = arith.constant 2 : index
    %56 = vector.load %arg2[%c0_75, %c2_76, %c2_77] : memref<1x16x16xf32, #tpu.memory_space<vmem>>, vector<1x8x9xf32>
    %57 = vector.shape_cast %56 : vector<1x8x9xf32> to vector<8x9xf32>
    %c16_78 = arith.constant 16 : index
    %c18_79 = arith.constant 18 : index
    %58 = vector.load %arg4[%c16_78, %c18_79] : memref<64x128xf32, #tpu.memory_space<vmem>>, vector<8x9xf32>
    tpu.vector_store %arg4[%c16_78, %c18_79], %57 {strides = array<i32>} : memref<64x128xf32, #tpu.memory_space<vmem>>, vector<8x9xf32>,
    %c0_80 = arith.constant 0 : index
    %c2_81 = arith.constant 2 : index
    %c3_82 = arith.constant 3 : index
    %59 = vector.load %arg2[%c0_80, %c2_81, %c3_82] : memref<1x16x16xf32, #tpu.memory_space<vmem>>, vector<1x8x9xf32>
    %60 = vector.shape_cast %59 : vector<1x8x9xf32> to vector<8x9xf32>
    %c24_83 = arith.constant 24 : index
    %c18_84 = arith.constant 18 : index
    %61 = vector.load %arg4[%c24_83, %c18_84] : memref<64x128xf32, #tpu.memory_space<vmem>>, vector<8x9xf32>
    tpu.vector_store %arg4[%c24_83, %c18_84], %60 {strides = array<i32>} : memref<64x128xf32, #tpu.memory_space<vmem>>, vector<8x9xf32>,
    %c0_85 = arith.constant 0 : index
    %c2_86 = arith.constant 2 : index
    %c4_87 = arith.constant 4 : index
    %62 = vector.load %arg2[%c0_85, %c2_86, %c4_87] : memref<1x16x16xf32, #tpu.memory_space<vmem>>, vector<1x8x9xf32>
    %63 = vector.shape_cast %62 : vector<1x8x9xf32> to vector<8x9xf32>
    %c32_88 = arith.constant 32 : index
    %c18_89 = arith.constant 18 : index
    %64 = vector.load %arg4[%c32_88, %c18_89] : memref<64x128xf32, #tpu.memory_space<vmem>>, vector<8x9xf32>
    tpu.vector_store %arg4[%c32_88, %c18_89], %63 {strides = array<i32>} : memref<64x128xf32, #tpu.memory_space<vmem>>, vector<8x9xf32>,
    %c0_90 = arith.constant 0 : index
    %c2_91 = arith.constant 2 : index
    %c5_92 = arith.constant 5 : index
    %65 = vector.load %arg2[%c0_90, %c2_91, %c5_92] : memref<1x16x16xf32, #tpu.memory_space<vmem>>, vector<1x8x9xf32>
    %66 = vector.shape_cast %65 : vector<1x8x9xf32> to vector<8x9xf32>
    %c40_93 = arith.constant 40 : index
    %c18_94 = arith.constant 18 : index
    %67 = vector.load %arg4[%c40_93, %c18_94] : memref<64x128xf32, #tpu.memory_space<vmem>>, vector<8x9xf32>
    tpu.vector_store %arg4[%c40_93, %c18_94], %66 {strides = array<i32>} : memref<64x128xf32, #tpu.memory_space<vmem>>, vector<8x9xf32>,
    %c0_95 = arith.constant 0 : index
    %c2_96 = arith.constant 2 : index
    %c6_97 = arith.constant 6 : index
    %68 = vector.load %arg2[%c0_95, %c2_96, %c6_97] : memref<1x16x16xf32, #tpu.memory_space<vmem>>, vector<1x8x9xf32>
    %69 = vector.shape_cast %68 : vector<1x8x9xf32> to vector<8x9xf32>
    %c48_98 = arith.constant 48 : index
    %c18_99 = arith.constant 18 : index
    %70 = vector.load %arg4[%c48_98, %c18_99] : memref<64x128xf32, #tpu.memory_space<vmem>>, vector<8x9xf32>
    tpu.vector_store %arg4[%c48_98, %c18_99], %69 {strides = array<i32>} : memref<64x128xf32, #tpu.memory_space<vmem>>, vector<8x9xf32>,
    %c0_100 = arith.constant 0 : index
    %c2_101 = arith.constant 2 : index
    %c7_102 = arith.constant 7 : index
    %71 = vector.load %arg2[%c0_100, %c2_101, %c7_102] : memref<1x16x16xf32, #tpu.memory_space<vmem>>, vector<1x8x9xf32>
    %72 = vector.shape_cast %71 : vector<1x8x9xf32> to vector<8x9xf32>
    %c56_103 = arith.constant 56 : index
    %c18_104 = arith.constant 18 : index
    %73 = vector.load %arg4[%c56_103, %c18_104] : memref<64x128xf32, #tpu.memory_space<vmem>>, vector<8x9xf32>
    tpu.vector_store %arg4[%c56_103, %c18_104], %72 {strides = array<i32>} : memref<64x128xf32, #tpu.memory_space<vmem>>, vector<8x9xf32>,
    %c0_105 = arith.constant 0 : index
    %c3_106 = arith.constant 3 : index
    %c0_107 = arith.constant 0 : index
    %74 = vector.load %arg2[%c0_105, %c3_106, %c0_107] : memref<1x16x16xf32, #tpu.memory_space<vmem>>, vector<1x8x9xf32>
    %75 = vector.shape_cast %74 : vector<1x8x9xf32> to vector<8x9xf32>
    %c0_108 = arith.constant 0 : index
    %c27 = arith.constant 27 : index
    %76 = vector.load %arg4[%c0_108, %c27] : memref<64x128xf32, #tpu.memory_space<vmem>>, vector<8x9xf32>
    tpu.vector_store %arg4[%c0_108, %c27], %75 {strides = array<i32>} : memref<64x128xf32, #tpu.memory_space<vmem>>, vector<8x9xf32>,
    %c0_109 = arith.constant 0 : index
    %c3_110 = arith.constant 3 : index
    %c1_111 = arith.constant 1 : index
    %77 = vector.load %arg2[%c0_109, %c3_110, %c1_111] : memref<1x16x16xf32, #tpu.memory_space<vmem>>, vector<1x8x9xf32>
    %78 = vector.shape_cast %77 : vector<1x8x9xf32> to vector<8x9xf32>
    %c8_112 = arith.constant 8 : index
    %c27_113 = arith.constant 27 : index
    %79 = vector.load %arg4[%c8_112, %c27_113] : memref<64x128xf32, #tpu.memory_space<vmem>>, vector<8x9xf32>
    tpu.vector_store %arg4[%c8_112, %c27_113], %78 {strides = array<i32>} : memref<64x128xf32, #tpu.memory_space<vmem>>, vector<8x9xf32>,
    %c0_114 = arith.constant 0 : index
    %c3_115 = arith.constant 3 : index
    %c2_116 = arith.constant 2 : index
    %80 = vector.load %arg2[%c0_114, %c3_115, %c2_116] : memref<1x16x16xf32, #tpu.memory_space<vmem>>, vector<1x8x9xf32>
    %81 = vector.shape_cast %80 : vector<1x8x9xf32> to vector<8x9xf32>
    %c16_117 = arith.constant 16 : index
    %c27_118 = arith.constant 27 : index
    %82 = vector.load %arg4[%c16_117, %c27_118] : memref<64x128xf32, #tpu.memory_space<vmem>>, vector<8x9xf32>
    tpu.vector_store %arg4[%c16_117, %c27_118], %81 {strides = array<i32>} : memref<64x128xf32, #tpu.memory_space<vmem>>, vector<8x9xf32>,
    %c0_119 = arith.constant 0 : index
    %c3_120 = arith.constant 3 : index
    %c3_121 = arith.constant 3 : index
    %83 = vector.load %arg2[%c0_119, %c3_120, %c3_121] : memref<1x16x16xf32, #tpu.memory_space<vmem>>, vector<1x8x9xf32>
    %84 = vector.shape_cast %83 : vector<1x8x9xf32> to vector<8x9xf32>
    %c24_122 = arith.constant 24 : index
    %c27_123 = arith.constant 27 : index
    %85 = vector.load %arg4[%c24_122, %c27_123] : memref<64x128xf32, #tpu.memory_space<vmem>>, vector<8x9xf32>
    tpu.vector_store %arg4[%c24_122, %c27_123], %84 {strides = array<i32>} : memref<64x128xf32, #tpu.memory_space<vmem>>, vector<8x9xf32>,
    %c0_124 = arith.constant 0 : index
    %c3_125 = arith.constant 3 : index
    %c4_126 = arith.constant 4 : index
    %86 = vector.load %arg2[%c0_124, %c3_125, %c4_126] : memref<1x16x16xf32, #tpu.memory_space<vmem>>, vector<1x8x9xf32>
    %87 = vector.shape_cast %86 : vector<1x8x9xf32> to vector<8x9xf32>
    %c32_127 = arith.constant 32 : index
    %c27_128 = arith.constant 27 : index
    %88 = vector.load %arg4[%c32_127, %c27_128] : memref<64x128xf32, #tpu.memory_space<vmem>>, vector<8x9xf32>
    tpu.vector_store %arg4[%c32_127, %c27_128], %87 {strides = array<i32>} : memref<64x128xf32, #tpu.memory_space<vmem>>, vector<8x9xf32>,
    %c0_129 = arith.constant 0 : index
    %c3_130 = arith.constant 3 : index
    %c5_131 = arith.constant 5 : index
    %89 = vector.load %arg2[%c0_129, %c3_130, %c5_131] : memref<1x16x16xf32, #tpu.memory_space<vmem>>, vector<1x8x9xf32>
    %90 = vector.shape_cast %89 : vector<1x8x9xf32> to vector<8x9xf32>
    %c40_132 = arith.constant 40 : index
    %c27_133 = arith.constant 27 : index
    %91 = vector.load %arg4[%c40_132, %c27_133] : memref<64x128xf32, #tpu.memory_space<vmem>>, vector<8x9xf32>
    tpu.vector_store %arg4[%c40_132, %c27_133], %90 {strides = array<i32>} : memref<64x128xf32, #tpu.memory_space<vmem>>, vector<8x9xf32>,
    %c0_134 = arith.constant 0 : index
    %c3_135 = arith.constant 3 : index
    %c6_136 = arith.constant 6 : index
    %92 = vector.load %arg2[%c0_134, %c3_135, %c6_136] : memref<1x16x16xf32, #tpu.memory_space<vmem>>, vector<1x8x9xf32>
    %93 = vector.shape_cast %92 : vector<1x8x9xf32> to vector<8x9xf32>
    %c48_137 = arith.constant 48 : index
    %c27_138 = arith.constant 27 : index
    %94 = vector.load %arg4[%c48_137, %c27_138] : memref<64x128xf32, #tpu.memory_space<vmem>>, vector<8x9xf32>
    tpu.vector_store %arg4[%c48_137, %c27_138], %93 {strides = array<i32>} : memref<64x128xf32, #tpu.memory_space<vmem>>, vector<8x9xf32>,
    %c0_139 = arith.constant 0 : index
    %c3_140 = arith.constant 3 : index
    %c7_141 = arith.constant 7 : index
    %95 = vector.load %arg2[%c0_139, %c3_140, %c7_141] : memref<1x16x16xf32, #tpu.memory_space<vmem>>, vector<1x8x9xf32>
    %96 = vector.shape_cast %95 : vector<1x8x9xf32> to vector<8x9xf32>
    %c56_142 = arith.constant 56 : index
    %c27_143 = arith.constant 27 : index
    %97 = vector.load %arg4[%c56_142, %c27_143] : memref<64x128xf32, #tpu.memory_space<vmem>>, vector<8x9xf32>
    tpu.vector_store %arg4[%c56_142, %c27_143], %96 {strides = array<i32>} : memref<64x128xf32, #tpu.memory_space<vmem>>, vector<8x9xf32>,
    %c0_144 = arith.constant 0 : index
    %c4_145 = arith.constant 4 : index
    %c0_146 = arith.constant 0 : index
    %98 = vector.load %arg2[%c0_144, %c4_145, %c0_146] : memref<1x16x16xf32, #tpu.memory_space<vmem>>, vector<1x8x9xf32>
    %99 = vector.shape_cast %98 : vector<1x8x9xf32> to vector<8x9xf32>
    %c0_147 = arith.constant 0 : index
    %c36 = arith.constant 36 : index
    %100 = vector.load %arg4[%c0_147, %c36] : memref<64x128xf32, #tpu.memory_space<vmem>>, vector<8x9xf32>
    tpu.vector_store %arg4[%c0_147, %c36], %99 {strides = array<i32>} : memref<64x128xf32, #tpu.memory_space<vmem>>, vector<8x9xf32>,
    %c0_148 = arith.constant 0 : index
    %c4_149 = arith.constant 4 : index
    %c1_150 = arith.constant 1 : index
    %101 = vector.load %arg2[%c0_148, %c4_149, %c1_150] : memref<1x16x16xf32, #tpu.memory_space<vmem>>, vector<1x8x9xf32>
    %102 = vector.shape_cast %101 : vector<1x8x9xf32> to vector<8x9xf32>
    %c8_151 = arith.constant 8 : index
    %c36_152 = arith.constant 36 : index
    %103 = vector.load %arg4[%c8_151, %c36_152] : memref<64x128xf32, #tpu.memory_space<vmem>>, vector<8x9xf32>
    tpu.vector_store %arg4[%c8_151, %c36_152], %102 {strides = array<i32>} : memref<64x128xf32, #tpu.memory_space<vmem>>, vector<8x9xf32>,
    %c0_153 = arith.constant 0 : index
    %c4_154 = arith.constant 4 : index
    %c2_155 = arith.constant 2 : index
    %104 = vector.load %arg2[%c0_153, %c4_154, %c2_155] : memref<1x16x16xf32, #tpu.memory_space<vmem>>, vector<1x8x9xf32>
    %105 = vector.shape_cast %104 : vector<1x8x9xf32> to vector<8x9xf32>
    %c16_156 = arith.constant 16 : index
    %c36_157 = arith.constant 36 : index
    %106 = vector.load %arg4[%c16_156, %c36_157] : memref<64x128xf32, #tpu.memory_space<vmem>>, vector<8x9xf32>
    tpu.vector_store %arg4[%c16_156, %c36_157], %105 {strides = array<i32>} : memref<64x128xf32, #tpu.memory_space<vmem>>, vector<8x9xf32>,
    %c0_158 = arith.constant 0 : index
    %c4_159 = arith.constant 4 : index
    %c3_160 = arith.constant 3 : index
    %107 = vector.load %arg2[%c0_158, %c4_159, %c3_160] : memref<1x16x16xf32, #tpu.memory_space<vmem>>, vector<1x8x9xf32>
    %108 = vector.shape_cast %107 : vector<1x8x9xf32> to vector<8x9xf32>
    %c24_161 = arith.constant 24 : index
    %c36_162 = arith.constant 36 : index
    %109 = vector.load %arg4[%c24_161, %c36_162] : memref<64x128xf32, #tpu.memory_space<vmem>>, vector<8x9xf32>
    tpu.vector_store %arg4[%c24_161, %c36_162], %108 {strides = array<i32>} : memref<64x128xf32, #tpu.memory_space<vmem>>, vector<8x9xf32>,
    %c0_163 = arith.constant 0 : index
    %c4_164 = arith.constant 4 : index
    %c4_165 = arith.constant 4 : index
    %110 = vector.load %arg2[%c0_163, %c4_164, %c4_165] : memref<1x16x16xf32, #tpu.memory_space<vmem>>, vector<1x8x9xf32>
    %111 = vector.shape_cast %110 : vector<1x8x9xf32> to vector<8x9xf32>
    %c32_166 = arith.constant 32 : index
    %c36_167 = arith.constant 36 : index
    %112 = vector.load %arg4[%c32_166, %c36_167] : memref<64x128xf32, #tpu.memory_space<vmem>>, vector<8x9xf32>
    tpu.vector_store %arg4[%c32_166, %c36_167], %111 {strides = array<i32>} : memref<64x128xf32, #tpu.memory_space<vmem>>, vector<8x9xf32>,
    %c0_168 = arith.constant 0 : index
    %c4_169 = arith.constant 4 : index
    %c5_170 = arith.constant 5 : index
    %113 = vector.load %arg2[%c0_168, %c4_169, %c5_170] : memref<1x16x16xf32, #tpu.memory_space<vmem>>, vector<1x8x9xf32>
    %114 = vector.shape_cast %113 : vector<1x8x9xf32> to vector<8x9xf32>
    %c40_171 = arith.constant 40 : index
    %c36_172 = arith.constant 36 : index
    %115 = vector.load %arg4[%c40_171, %c36_172] : memref<64x128xf32, #tpu.memory_space<vmem>>, vector<8x9xf32>
    tpu.vector_store %arg4[%c40_171, %c36_172], %114 {strides = array<i32>} : memref<64x128xf32, #tpu.memory_space<vmem>>, vector<8x9xf32>,
    %c0_173 = arith.constant 0 : index
    %c4_174 = arith.constant 4 : index
    %c6_175 = arith.constant 6 : index
    %116 = vector.load %arg2[%c0_173, %c4_174, %c6_175] : memref<1x16x16xf32, #tpu.memory_space<vmem>>, vector<1x8x9xf32>
    %117 = vector.shape_cast %116 : vector<1x8x9xf32> to vector<8x9xf32>
    %c48_176 = arith.constant 48 : index
    %c36_177 = arith.constant 36 : index
    %118 = vector.load %arg4[%c48_176, %c36_177] : memref<64x128xf32, #tpu.memory_space<vmem>>, vector<8x9xf32>
    tpu.vector_store %arg4[%c48_176, %c36_177], %117 {strides = array<i32>} : memref<64x128xf32, #tpu.memory_space<vmem>>, vector<8x9xf32>,
    %c0_178 = arith.constant 0 : index
    %c4_179 = arith.constant 4 : index
    %c7_180 = arith.constant 7 : index
    %119 = vector.load %arg2[%c0_178, %c4_179, %c7_180] : memref<1x16x16xf32, #tpu.memory_space<vmem>>, vector<1x8x9xf32>
    %120 = vector.shape_cast %119 : vector<1x8x9xf32> to vector<8x9xf32>
    %c56_181 = arith.constant 56 : index
    %c36_182 = arith.constant 36 : index
    %121 = vector.load %arg4[%c56_181, %c36_182] : memref<64x128xf32, #tpu.memory_space<vmem>>, vector<8x9xf32>
    tpu.vector_store %arg4[%c56_181, %c36_182], %120 {strides = array<i32>} : memref<64x128xf32, #tpu.memory_space<vmem>>, vector<8x9xf32>,
    %c0_183 = arith.constant 0 : index
    %c5_184 = arith.constant 5 : index
    %c0_185 = arith.constant 0 : index
    %122 = vector.load %arg2[%c0_183, %c5_184, %c0_185] : memref<1x16x16xf32, #tpu.memory_space<vmem>>, vector<1x8x9xf32>
    %123 = vector.shape_cast %122 : vector<1x8x9xf32> to vector<8x9xf32>
    %c0_186 = arith.constant 0 : index
    %c45 = arith.constant 45 : index
    %124 = vector.load %arg4[%c0_186, %c45] : memref<64x128xf32, #tpu.memory_space<vmem>>, vector<8x9xf32>
    tpu.vector_store %arg4[%c0_186, %c45], %123 {strides = array<i32>} : memref<64x128xf32, #tpu.memory_space<vmem>>, vector<8x9xf32>,
    %c0_187 = arith.constant 0 : index
    %c5_188 = arith.constant 5 : index
    %c1_189 = arith.constant 1 : index
    %125 = vector.load %arg2[%c0_187, %c5_188, %c1_189] : memref<1x16x16xf32, #tpu.memory_space<vmem>>, vector<1x8x9xf32>
    %126 = vector.shape_cast %125 : vector<1x8x9xf32> to vector<8x9xf32>
    %c8_190 = arith.constant 8 : index
    %c45_191 = arith.constant 45 : index
    %127 = vector.load %arg4[%c8_190, %c45_191] : memref<64x128xf32, #tpu.memory_space<vmem>>, vector<8x9xf32>
    tpu.vector_store %arg4[%c8_190, %c45_191], %126 {strides = array<i32>} : memref<64x128xf32, #tpu.memory_space<vmem>>, vector<8x9xf32>,
    %c0_192 = arith.constant 0 : index
    %c5_193 = arith.constant 5 : index
    %c2_194 = arith.constant 2 : index
    %128 = vector.load %arg2[%c0_192, %c5_193, %c2_194] : memref<1x16x16xf32, #tpu.memory_space<vmem>>, vector<1x8x9xf32>
    %129 = vector.shape_cast %128 : vector<1x8x9xf32> to vector<8x9xf32>
    %c16_195 = arith.constant 16 : index
    %c45_196 = arith.constant 45 : index
    %130 = vector.load %arg4[%c16_195, %c45_196] : memref<64x128xf32, #tpu.memory_space<vmem>>, vector<8x9xf32>
    tpu.vector_store %arg4[%c16_195, %c45_196], %129 {strides = array<i32>} : memref<64x128xf32, #tpu.memory_space<vmem>>, vector<8x9xf32>,
    %c0_197 = arith.constant 0 : index
    %c5_198 = arith.constant 5 : index
    %c3_199 = arith.constant 3 : index
    %131 = vector.load %arg2[%c0_197, %c5_198, %c3_199] : memref<1x16x16xf32, #tpu.memory_space<vmem>>, vector<1x8x9xf32>
    %132 = vector.shape_cast %131 : vector<1x8x9xf32> to vector<8x9xf32>
    %c24_200 = arith.constant 24 : index
    %c45_201 = arith.constant 45 : index
    %133 = vector.load %arg4[%c24_200, %c45_201] : memref<64x128xf32, #tpu.memory_space<vmem>>, vector<8x9xf32>
    tpu.vector_store %arg4[%c24_200, %c45_201], %132 {strides = array<i32>} : memref<64x128xf32, #tpu.memory_space<vmem>>, vector<8x9xf32>,
    %c0_202 = arith.constant 0 : index
    %c5_203 = arith.constant 5 : index
    %c4_204 = arith.constant 4 : index
    %134 = vector.load %arg2[%c0_202, %c5_203, %c4_204] : memref<1x16x16xf32, #tpu.memory_space<vmem>>, vector<1x8x9xf32>
    %135 = vector.shape_cast %134 : vector<1x8x9xf32> to vector<8x9xf32>
    %c32_205 = arith.constant 32 : index
    %c45_206 = arith.constant 45 : index
    %136 = vector.load %arg4[%c32_205, %c45_206] : memref<64x128xf32, #tpu.memory_space<vmem>>, vector<8x9xf32>
    tpu.vector_store %arg4[%c32_205, %c45_206], %135 {strides = array<i32>} : memref<64x128xf32, #tpu.memory_space<vmem>>, vector<8x9xf32>,
    %c0_207 = arith.constant 0 : index
    %c5_208 = arith.constant 5 : index
    %c5_209 = arith.constant 5 : index
    %137 = vector.load %arg2[%c0_207, %c5_208, %c5_209] : memref<1x16x16xf32, #tpu.memory_space<vmem>>, vector<1x8x9xf32>
    %138 = vector.shape_cast %137 : vector<1x8x9xf32> to vector<8x9xf32>
    %c40_210 = arith.constant 40 : index
    %c45_211 = arith.constant 45 : index
    %139 = vector.load %arg4[%c40_210, %c45_211] : memref<64x128xf32, #tpu.memory_space<vmem>>, vector<8x9xf32>
    tpu.vector_store %arg4[%c40_210, %c45_211], %138 {strides = array<i32>} : memref<64x128xf32, #tpu.memory_space<vmem>>, vector<8x9xf32>,
    %c0_212 = arith.constant 0 : index
    %c5_213 = arith.constant 5 : index
    %c6_214 = arith.constant 6 : index
    %140 = vector.load %arg2[%c0_212, %c5_213, %c6_214] : memref<1x16x16xf32, #tpu.memory_space<vmem>>, vector<1x8x9xf32>
    %141 = vector.shape_cast %140 : vector<1x8x9xf32> to vector<8x9xf32>
    %c48_215 = arith.constant 48 : index
    %c45_216 = arith.constant 45 : index
    %142 = vector.load %arg4[%c48_215, %c45_216] : memref<64x128xf32, #tpu.memory_space<vmem>>, vector<8x9xf32>
    tpu.vector_store %arg4[%c48_215, %c45_216], %141 {strides = array<i32>} : memref<64x128xf32, #tpu.memory_space<vmem>>, vector<8x9xf32>,
    %c0_217 = arith.constant 0 : index
    %c5_218 = arith.constant 5 : index
    %c7_219 = arith.constant 7 : index
    %143 = vector.load %arg2[%c0_217, %c5_218, %c7_219] : memref<1x16x16xf32, #tpu.memory_space<vmem>>, vector<1x8x9xf32>
    %144 = vector.shape_cast %143 : vector<1x8x9xf32> to vector<8x9xf32>
    %c56_220 = arith.constant 56 : index
    %c45_221 = arith.constant 45 : index
    %145 = vector.load %arg4[%c56_220, %c45_221] : memref<64x128xf32, #tpu.memory_space<vmem>>, vector<8x9xf32>
    tpu.vector_store %arg4[%c56_220, %c45_221], %144 {strides = array<i32>} : memref<64x128xf32, #tpu.memory_space<vmem>>, vector<8x9xf32>,
    %c0_222 = arith.constant 0 : index
    %c6_223 = arith.constant 6 : index
    %c0_224 = arith.constant 0 : index
    %146 = vector.load %arg2[%c0_222, %c6_223, %c0_224] : memref<1x16x16xf32, #tpu.memory_space<vmem>>, vector<1x8x9xf32>
    %147 = vector.shape_cast %146 : vector<1x8x9xf32> to vector<8x9xf32>
    %c0_225 = arith.constant 0 : index
    %c54 = arith.constant 54 : index
    %148 = vector.load %arg4[%c0_225, %c54] : memref<64x128xf32, #tpu.memory_space<vmem>>, vector<8x9xf32>
    tpu.vector_store %arg4[%c0_225, %c54], %147 {strides = array<i32>} : memref<64x128xf32, #tpu.memory_space<vmem>>, vector<8x9xf32>,
    %c0_226 = arith.constant 0 : index
    %c6_227 = arith.constant 6 : index
    %c1_228 = arith.constant 1 : index
    %149 = vector.load %arg2[%c0_226, %c6_227, %c1_228] : memref<1x16x16xf32, #tpu.memory_space<vmem>>, vector<1x8x9xf32>
    %150 = vector.shape_cast %149 : vector<1x8x9xf32> to vector<8x9xf32>
    %c8_229 = arith.constant 8 : index
    %c54_230 = arith.constant 54 : index
    %151 = vector.load %arg4[%c8_229, %c54_230] : memref<64x128xf32, #tpu.memory_space<vmem>>, vector<8x9xf32>
    tpu.vector_store %arg4[%c8_229, %c54_230], %150 {strides = array<i32>} : memref<64x128xf32, #tpu.memory_space<vmem>>, vector<8x9xf32>,
    %c0_231 = arith.constant 0 : index
    %c6_232 = arith.constant 6 : index
    %c2_233 = arith.constant 2 : index
    %152 = vector.load %arg2[%c0_231, %c6_232, %c2_233] : memref<1x16x16xf32, #tpu.memory_space<vmem>>, vector<1x8x9xf32>
    %153 = vector.shape_cast %152 : vector<1x8x9xf32> to vector<8x9xf32>
    %c16_234 = arith.constant 16 : index
    %c54_235 = arith.constant 54 : index
    %154 = vector.load %arg4[%c16_234, %c54_235] : memref<64x128xf32, #tpu.memory_space<vmem>>, vector<8x9xf32>
    tpu.vector_store %arg4[%c16_234, %c54_235], %153 {strides = array<i32>} : memref<64x128xf32, #tpu.memory_space<vmem>>, vector<8x9xf32>,
    %c0_236 = arith.constant 0 : index
    %c6_237 = arith.constant 6 : index
    %c3_238 = arith.constant 3 : index
    %155 = vector.load %arg2[%c0_236, %c6_237, %c3_238] : memref<1x16x16xf32, #tpu.memory_space<vmem>>, vector<1x8x9xf32>
    %156 = vector.shape_cast %155 : vector<1x8x9xf32> to vector<8x9xf32>
    %c24_239 = arith.constant 24 : index
    %c54_240 = arith.constant 54 : index
    %157 = vector.load %arg4[%c24_239, %c54_240] : memref<64x128xf32, #tpu.memory_space<vmem>>, vector<8x9xf32>
    tpu.vector_store %arg4[%c24_239, %c54_240], %156 {strides = array<i32>} : memref<64x128xf32, #tpu.memory_space<vmem>>, vector<8x9xf32>,
    %c0_241 = arith.constant 0 : index
    %c6_242 = arith.constant 6 : index
    %c4_243 = arith.constant 4 : index
    %158 = vector.load %arg2[%c0_241, %c6_242, %c4_243] : memref<1x16x16xf32, #tpu.memory_space<vmem>>, vector<1x8x9xf32>
    %159 = vector.shape_cast %158 : vector<1x8x9xf32> to vector<8x9xf32>
    %c32_244 = arith.constant 32 : index
    %c54_245 = arith.constant 54 : index
    %160 = vector.load %arg4[%c32_244, %c54_245] : memref<64x128xf32, #tpu.memory_space<vmem>>, vector<8x9xf32>
    tpu.vector_store %arg4[%c32_244, %c54_245], %159 {strides = array<i32>} : memref<64x128xf32, #tpu.memory_space<vmem>>, vector<8x9xf32>,
    %c0_246 = arith.constant 0 : index
    %c6_247 = arith.constant 6 : index
    %c5_248 = arith.constant 5 : index
    %161 = vector.load %arg2[%c0_246, %c6_247, %c5_248] : memref<1x16x16xf32, #tpu.memory_space<vmem>>, vector<1x8x9xf32>
    %162 = vector.shape_cast %161 : vector<1x8x9xf32> to vector<8x9xf32>
    %c40_249 = arith.constant 40 : index
    %c54_250 = arith.constant 54 : index
    %163 = vector.load %arg4[%c40_249, %c54_250] : memref<64x128xf32, #tpu.memory_space<vmem>>, vector<8x9xf32>
    tpu.vector_store %arg4[%c40_249, %c54_250], %162 {strides = array<i32>} : memref<64x128xf32, #tpu.memory_space<vmem>>, vector<8x9xf32>,
    %c0_251 = arith.constant 0 : index
    %c6_252 = arith.constant 6 : index
    %c6_253 = arith.constant 6 : index
    %164 = vector.load %arg2[%c0_251, %c6_252, %c6_253] : memref<1x16x16xf32, #tpu.memory_space<vmem>>, vector<1x8x9xf32>
    %165 = vector.shape_cast %164 : vector<1x8x9xf32> to vector<8x9xf32>
    %c48_254 = arith.constant 48 : index
    %c54_255 = arith.constant 54 : index
    %166 = vector.load %arg4[%c48_254, %c54_255] : memref<64x128xf32, #tpu.memory_space<vmem>>, vector<8x9xf32>
    tpu.vector_store %arg4[%c48_254, %c54_255], %165 {strides = array<i32>} : memref<64x128xf32, #tpu.memory_space<vmem>>, vector<8x9xf32>,
    %c0_256 = arith.constant 0 : index
    %c6_257 = arith.constant 6 : index
    %c7_258 = arith.constant 7 : index
    %167 = vector.load %arg2[%c0_256, %c6_257, %c7_258] : memref<1x16x16xf32, #tpu.memory_space<vmem>>, vector<1x8x9xf32>
    %168 = vector.shape_cast %167 : vector<1x8x9xf32> to vector<8x9xf32>
    %c56_259 = arith.constant 56 : index
    %c54_260 = arith.constant 54 : index
    %169 = vector.load %arg4[%c56_259, %c54_260] : memref<64x128xf32, #tpu.memory_space<vmem>>, vector<8x9xf32>
    tpu.vector_store %arg4[%c56_259, %c54_260], %168 {strides = array<i32>} : memref<64x128xf32, #tpu.memory_space<vmem>>, vector<8x9xf32>,
    %c0_261 = arith.constant 0 : index
    %c7_262 = arith.constant 7 : index
    %c0_263 = arith.constant 0 : index
    %170 = vector.load %arg2[%c0_261, %c7_262, %c0_263] : memref<1x16x16xf32, #tpu.memory_space<vmem>>, vector<1x8x9xf32>
    %171 = vector.shape_cast %170 : vector<1x8x9xf32> to vector<8x9xf32>
    %c0_264 = arith.constant 0 : index
    %c63 = arith.constant 63 : index
    %172 = vector.load %arg4[%c0_264, %c63] : memref<64x128xf32, #tpu.memory_space<vmem>>, vector<8x9xf32>
    tpu.vector_store %arg4[%c0_264, %c63], %171 {strides = array<i32>} : memref<64x128xf32, #tpu.memory_space<vmem>>, vector<8x9xf32>,
    %c0_265 = arith.constant 0 : index
    %c7_266 = arith.constant 7 : index
    %c1_267 = arith.constant 1 : index
    %173 = vector.load %arg2[%c0_265, %c7_266, %c1_267] : memref<1x16x16xf32, #tpu.memory_space<vmem>>, vector<1x8x9xf32>
    %174 = vector.shape_cast %173 : vector<1x8x9xf32> to vector<8x9xf32>
    %c8_268 = arith.constant 8 : index
    %c63_269 = arith.constant 63 : index
    %175 = vector.load %arg4[%c8_268, %c63_269] : memref<64x128xf32, #tpu.memory_space<vmem>>, vector<8x9xf32>
    tpu.vector_store %arg4[%c8_268, %c63_269], %174 {strides = array<i32>} : memref<64x128xf32, #tpu.memory_space<vmem>>, vector<8x9xf32>,
    %c0_270 = arith.constant 0 : index
    %c7_271 = arith.constant 7 : index
    %c2_272 = arith.constant 2 : index
    %176 = vector.load %arg2[%c0_270, %c7_271, %c2_272] : memref<1x16x16xf32, #tpu.memory_space<vmem>>, vector<1x8x9xf32>
    %177 = vector.shape_cast %176 : vector<1x8x9xf32> to vector<8x9xf32>
    %c16_273 = arith.constant 16 : index
    %c63_274 = arith.constant 63 : index
    %178 = vector.load %arg4[%c16_273, %c63_274] : memref<64x128xf32, #tpu.memory_space<vmem>>, vector<8x9xf32>
    tpu.vector_store %arg4[%c16_273, %c63_274], %177 {strides = array<i32>} : memref<64x128xf32, #tpu.memory_space<vmem>>, vector<8x9xf32>,
    %c0_275 = arith.constant 0 : index
    %c7_276 = arith.constant 7 : index
    %c3_277 = arith.constant 3 : index
    %179 = vector.load %arg2[%c0_275, %c7_276, %c3_277] : memref<1x16x16xf32, #tpu.memory_space<vmem>>, vector<1x8x9xf32>
    %180 = vector.shape_cast %179 : vector<1x8x9xf32> to vector<8x9xf32>
    %c24_278 = arith.constant 24 : index
    %c63_279 = arith.constant 63 : index
    %181 = vector.load %arg4[%c24_278, %c63_279] : memref<64x128xf32, #tpu.memory_space<vmem>>, vector<8x9xf32>
    tpu.vector_store %arg4[%c24_278, %c63_279], %180 {strides = array<i32>} : memref<64x128xf32, #tpu.memory_space<vmem>>, vector<8x9xf32>,
    %c0_280 = arith.constant 0 : index
    %c7_281 = arith.constant 7 : index
    %c4_282 = arith.constant 4 : index
    %182 = vector.load %arg2[%c0_280, %c7_281, %c4_282] : memref<1x16x16xf32, #tpu.memory_space<vmem>>, vector<1x8x9xf32>
    %183 = vector.shape_cast %182 : vector<1x8x9xf32> to vector<8x9xf32>
    %c32_283 = arith.constant 32 : index
    %c63_284 = arith.constant 63 : index
    %184 = vector.load %arg4[%c32_283, %c63_284] : memref<64x128xf32, #tpu.memory_space<vmem>>, vector<8x9xf32>
    tpu.vector_store %arg4[%c32_283, %c63_284], %183 {strides = array<i32>} : memref<64x128xf32, #tpu.memory_space<vmem>>, vector<8x9xf32>,
    %c0_285 = arith.constant 0 : index
    %c7_286 = arith.constant 7 : index
    %c5_287 = arith.constant 5 : index
    %185 = vector.load %arg2[%c0_285, %c7_286, %c5_287] : memref<1x16x16xf32, #tpu.memory_space<vmem>>, vector<1x8x9xf32>
    %186 = vector.shape_cast %185 : vector<1x8x9xf32> to vector<8x9xf32>
    %c40_288 = arith.constant 40 : index
    %c63_289 = arith.constant 63 : index
    %187 = vector.load %arg4[%c40_288, %c63_289] : memref<64x128xf32, #tpu.memory_space<vmem>>, vector<8x9xf32>
    tpu.vector_store %arg4[%c40_288, %c63_289], %186 {strides = array<i32>} : memref<64x128xf32, #tpu.memory_space<vmem>>, vector<8x9xf32>,
    %c0_290 = arith.constant 0 : index
    %c7_291 = arith.constant 7 : index
    %c6_292 = arith.constant 6 : index
    %188 = vector.load %arg2[%c0_290, %c7_291, %c6_292] : memref<1x16x16xf32, #tpu.memory_space<vmem>>, vector<1x8x9xf32>
    %189 = vector.shape_cast %188 : vector<1x8x9xf32> to vector<8x9xf32>
    %c48_293 = arith.constant 48 : index
    %c63_294 = arith.constant 63 : index
    %190 = vector.load %arg4[%c48_293, %c63_294] : memref<64x128xf32, #tpu.memory_space<vmem>>, vector<8x9xf32>
    tpu.vector_store %arg4[%c48_293, %c63_294], %189 {strides = array<i32>} : memref<64x128xf32, #tpu.memory_space<vmem>>, vector<8x9xf32>,
    %c0_295 = arith.constant 0 : index
    %c7_296 = arith.constant 7 : index
    %c7_297 = arith.constant 7 : index
    %191 = vector.load %arg2[%c0_295, %c7_296, %c7_297] : memref<1x16x16xf32, #tpu.memory_space<vmem>>, vector<1x8x9xf32>
    %192 = vector.shape_cast %191 : vector<1x8x9xf32> to vector<8x9xf32>
    %c56_298 = arith.constant 56 : index
    %c63_299 = arith.constant 63 : index
    %193 = vector.load %arg4[%c56_298, %c63_299] : memref<64x128xf32, #tpu.memory_space<vmem>>, vector<8x9xf32>
    tpu.vector_store %arg4[%c56_298, %c63_299], %192 {strides = array<i32>} : memref<64x128xf32, #tpu.memory_space<vmem>>, vector<8x9xf32>,
    %c0_300 = arith.constant 0 : index
    %c8_301 = arith.constant 8 : index
    %c0_302 = arith.constant 0 : index
    %194 = vector.load %arg2[%c0_300, %c8_301, %c0_302] : memref<1x16x16xf32, #tpu.memory_space<vmem>>, vector<1x8x9xf32>
    %195 = vector.shape_cast %194 : vector<1x8x9xf32> to vector<8x9xf32>
    %c0_303 = arith.constant 0 : index
    %c72 = arith.constant 72 : index
    %196 = vector.load %arg4[%c0_303, %c72] : memref<64x128xf32, #tpu.memory_space<vmem>>, vector<8x9xf32>
    tpu.vector_store %arg4[%c0_303, %c72], %195 {strides = array<i32>} : memref<64x128xf32, #tpu.memory_space<vmem>>, vector<8x9xf32>,
    %c0_304 = arith.constant 0 : index
    %c8_305 = arith.constant 8 : index
    %c1_306 = arith.constant 1 : index
    %197 = vector.load %arg2[%c0_304, %c8_305, %c1_306] : memref<1x16x16xf32, #tpu.memory_space<vmem>>, vector<1x8x9xf32>
    %198 = vector.shape_cast %197 : vector<1x8x9xf32> to vector<8x9xf32>
    %c8_307 = arith.constant 8 : index
    %c72_308 = arith.constant 72 : index
    %199 = vector.load %arg4[%c8_307, %c72_308] : memref<64x128xf32, #tpu.memory_space<vmem>>, vector<8x9xf32>
    tpu.vector_store %arg4[%c8_307, %c72_308], %198 {strides = array<i32>} : memref<64x128xf32, #tpu.memory_space<vmem>>, vector<8x9xf32>,
    %c0_309 = arith.constant 0 : index
    %c8_310 = arith.constant 8 : index
    %c2_311 = arith.constant 2 : index
    %200 = vector.load %arg2[%c0_309, %c8_310, %c2_311] : memref<1x16x16xf32, #tpu.memory_space<vmem>>, vector<1x8x9xf32>
    %201 = vector.shape_cast %200 : vector<1x8x9xf32> to vector<8x9xf32>
    %c16_312 = arith.constant 16 : index
    %c72_313 = arith.constant 72 : index
    %202 = vector.load %arg4[%c16_312, %c72_313] : memref<64x128xf32, #tpu.memory_space<vmem>>, vector<8x9xf32>
    tpu.vector_store %arg4[%c16_312, %c72_313], %201 {strides = array<i32>} : memref<64x128xf32, #tpu.memory_space<vmem>>, vector<8x9xf32>,
    %c0_314 = arith.constant 0 : index
    %c8_315 = arith.constant 8 : index
    %c3_316 = arith.constant 3 : index
    %203 = vector.load %arg2[%c0_314, %c8_315, %c3_316] : memref<1x16x16xf32, #tpu.memory_space<vmem>>, vector<1x8x9xf32>
    %204 = vector.shape_cast %203 : vector<1x8x9xf32> to vector<8x9xf32>
    %c24_317 = arith.constant 24 : index
    %c72_318 = arith.constant 72 : index
    %205 = vector.load %arg4[%c24_317, %c72_318] : memref<64x128xf32, #tpu.memory_space<vmem>>, vector<8x9xf32>
    tpu.vector_store %arg4[%c24_317, %c72_318], %204 {strides = array<i32>} : memref<64x128xf32, #tpu.memory_space<vmem>>, vector<8x9xf32>,
    %c0_319 = arith.constant 0 : index
    %c8_320 = arith.constant 8 : index
    %c4_321 = arith.constant 4 : index
    %206 = vector.load %arg2[%c0_319, %c8_320, %c4_321] : memref<1x16x16xf32, #tpu.memory_space<vmem>>, vector<1x8x9xf32>
    %207 = vector.shape_cast %206 : vector<1x8x9xf32> to vector<8x9xf32>
    %c32_322 = arith.constant 32 : index
    %c72_323 = arith.constant 72 : index
    %208 = vector.load %arg4[%c32_322, %c72_323] : memref<64x128xf32, #tpu.memory_space<vmem>>, vector<8x9xf32>
    tpu.vector_store %arg4[%c32_322, %c72_323], %207 {strides = array<i32>} : memref<64x128xf32, #tpu.memory_space<vmem>>, vector<8x9xf32>,
    %c0_324 = arith.constant 0 : index
    %c8_325 = arith.constant 8 : index
    %c5_326 = arith.constant 5 : index
    %209 = vector.load %arg2[%c0_324, %c8_325, %c5_326] : memref<1x16x16xf32, #tpu.memory_space<vmem>>, vector<1x8x9xf32>
    %210 = vector.shape_cast %209 : vector<1x8x9xf32> to vector<8x9xf32>
    %c40_327 = arith.constant 40 : index
    %c72_328 = arith.constant 72 : index
    %211 = vector.load %arg4[%c40_327, %c72_328] : memref<64x128xf32, #tpu.memory_space<vmem>>, vector<8x9xf32>
    tpu.vector_store %arg4[%c40_327, %c72_328], %210 {strides = array<i32>} : memref<64x128xf32, #tpu.memory_space<vmem>>, vector<8x9xf32>,
    %c0_329 = arith.constant 0 : index
    %c8_330 = arith.constant 8 : index
    %c6_331 = arith.constant 6 : index
    %212 = vector.load %arg2[%c0_329, %c8_330, %c6_331] : memref<1x16x16xf32, #tpu.memory_space<vmem>>, vector<1x8x9xf32>
    %213 = vector.shape_cast %212 : vector<1x8x9xf32> to vector<8x9xf32>
    %c48_332 = arith.constant 48 : index
    %c72_333 = arith.constant 72 : index
    %214 = vector.load %arg4[%c48_332, %c72_333] : memref<64x128xf32, #tpu.memory_space<vmem>>, vector<8x9xf32>
    tpu.vector_store %arg4[%c48_332, %c72_333], %213 {strides = array<i32>} : memref<64x128xf32, #tpu.memory_space<vmem>>, vector<8x9xf32>,
    %c0_334 = arith.constant 0 : index
    %c8_335 = arith.constant 8 : index
    %c7_336 = arith.constant 7 : index
    %215 = vector.load %arg2[%c0_334, %c8_335, %c7_336] : memref<1x16x16xf32, #tpu.memory_space<vmem>>, vector<1x8x9xf32>
    %216 = vector.shape_cast %215 : vector<1x8x9xf32> to vector<8x9xf32>
    %c56_337 = arith.constant 56 : index
    %c72_338 = arith.constant 72 : index
    %217 = vector.load %arg4[%c56_337, %c72_338] : memref<64x128xf32, #tpu.memory_space<vmem>>, vector<8x9xf32>
    tpu.vector_store %arg4[%c56_337, %c72_338], %216 {strides = array<i32>} : memref<64x128xf32, #tpu.memory_space<vmem>>, vector<8x9xf32>,
    %c0_339 = arith.constant 0 : index
    %c0_340 = arith.constant 0 : index
    %218 = vector.load %arg1[%c0_339, %c0_340] : memref<8x64xf32, #tpu.memory_space<vmem>>, vector<8x64xf32>
    %c0_341 = arith.constant 0 : index
    %c0_342 = arith.constant 0 : index
    %219 = vector.load %arg4[%c0_341, %c0_342] : memref<64x128xf32, #tpu.memory_space<vmem>>, vector<64x128xf32>
    %cst_343 = arith.constant dense<0.000000e+00> : vector<8x128xf32>
    %220 = tpu.matmul %218, %219, %cst_343 {dimension_numbers = #tpu.dot_dimension_numbers<[1], [0], [0], [1], [0, 0, 1, 1], [], []>, precision = #tpu.contract_precision<fp32>} : vector<8x64xf32>, vector<64x128xf32>, vector<8x128xf32> -> vector<8x128xf32>
    %c0_344 = arith.constant 0 : index
    %c0_345 = arith.constant 0 : index
    %c0_346 = arith.constant 0 : index
    %221 = vector.load %arg3[%c0_344, %c0_345, %c0_346] : memref<1x8x128xf32, #tpu.memory_space<vmem>>, vector<1x8x128xf32>
    %222 = vector.shape_cast %221 : vector<1x8x128xf32> to vector<8x128xf32>
    %223 = vector.shape_cast %220 : vector<8x128xf32> to vector<1x8x128xf32>
    tpu.vector_store %arg3[%c0_344, %c0_345, %c0_346], %223 {strides = array<i32>} : memref<1x8x128xf32, #tpu.memory_space<vmem>>, vector<1x8x128xf32>,
    return
  }
  func.func @transform_0(%arg0: i32) -> (i32, i32) {
    %c0_i32 = arith.constant 0 : i32
    %c0_i32_0 = arith.constant 0 : i32
    %c0_i32_1 = arith.constant 0 : i32
    return %c0_i32, %c0_i32_0 : i32, i32
  }
  func.func @transform_1(%arg0: i32) -> (i32, i32, i32) {
    %c0_i32 = arith.constant 0 : i32
    %c0_i32_0 = arith.constant 0 : i32
    %c0_i32_1 = arith.constant 0 : i32
    return %arg0, %c0_i32, %c0_i32_0 : i32, i32, i32
  }
  func.func @transform_2(%arg0: i32) -> (i32, i32, i32) {
    %c0_i32 = arith.constant 0 : i32
    %c0_i32_0 = arith.constant 0 : i32
    %c0_i32_1 = arith.constant 0 : i32
    return %arg0, %c0_i32, %c0_i32_0 : i32, i32, i32
  }
}

</mosaic_0001>

<bundles_post_ra>
// kernel: tpu_custom_call.1
= control target key start
LH: loop header
LB: loop body
LE: loop exit
PB: predicated region body
PF: predicated region fallthrough
CT: control target
= control target key end

     0   :  { %7 = vsyncpa [#allocation4], 0  ;;  %s2385_s0 = inlined_call_operand.hbm [shape: f32[8,64], index: 0, kind: input, shape index: {}]   ;;  %s2386_s1 = inlined_call_operand.hbm [shape: f32[8,16,16], index: 1, kind: input, shape index: {}]   ;;  %s2387_s2 = inlined_call_operand.hbm [shape: f32[8,8,128], index: 2, kind: output, shape index: {}]  }
   0x1   :  { %8 = vsyncpa [#allocation7], 0 }
   0x2   :  { %10 = vsyncpa [#allocation7 + $0x1], 0 }
   0x3   :  { %11 = vsyncpa [#allocation5], 0 }
   0x4   :  { %13 = vsyncpa [#allocation5 + $0x1], 0  ;;  %s1889_s9 = smov 0   ;;  %s1891_s10 = smov 0  }
   0x5   :  { %s1893_s11 = smov 0   ;;  %s1895_s12 = smov 0  }
   0x6 LB: > { %s1910_s13 = sadd.s32 4294967295, %s1793_s12   ;;  %s1267_s14 = sadd.s32 4294967294, %s1793_s12   ;;  %s1793_s12 = sphi %s1895_s12, %s2410_s12   ;;  %s1789_s11 = sphi %s1893_s11, %s2409_s11   ;;  %s1785_s10 = sphi %s1891_s10, %s2408_s10   ;;  %s1781_s9 = sphi %s1889_s9, %s2407_s9  }
   0x7   : > { %s1914_s15 = sadd.s32 1, %s1793_s12   ;;  %s47_s16 = sadd.s32 1, %s1789_s11 }
   0x8   : > { %s44_s17 = ssub.s32 %s1793_s12, %s1914_s15  ;;  %p54_p0 = scmp.ne.s32.totalorder %s1789_s11, %s1785_s10 }
   0x9   : > { %p45_p1 = scmp.eq.s32.totalorder %s44_s17, 0  ;;  %p55_p2 = scmp.eq.s32.totalorder %s1793_s12, 0 }
   0xa   : > { %p60_p3 = scmp.ne.s32.totalorder %s1785_s10, %s1781_s9  ;;  %p2388_p4 = scmp.eq.s32.totalorder %s1910_s13, 0 }
   0xb   : > { %s1926_s18 = scalar_select %p45_p1, %s1789_s11, %s47_s16  }
   0xc   : > { %p1928_p5 = por %p55_p2, %p54_p0  ;;  %p1934_p6 = por %p2388_p4, %p60_p3 }
   0xd   : > { %p84_p7 = scmp.eq.s32.totalorder %s1910_s13, 7  ;;  %p90_p8 = scmp.eq.s32.totalorder %s1267_s14, 7 }
   0xe   : > { %s2394_s20 = scalar_select %p1934_p6, 1, 0 }
   0xf   : > { %p1268_p9 = scmp.ge.s32.totalorder %s1793_s12, 1  ;;  %p97_p10 = scmp.lt.s32.totalorder %s1793_s12, 9 }
  0x10   : > { %p1941_p11 = por %p84_p7, %p54_p0  ;;  %p1945_p12 = por %p90_p8, %p60_p3 }
  0x11   : > { %p1949_p13 = pnand %p1268_p9, %p97_p10  ;;  %s1795_s24 = smov [#allocation3]  }
  0x12   : > { %s2395_s21 = scalar_select %p1941_p11, 1, 0 }
  0x13   : > { %s2396_s22 = scalar_select %p1945_p12, 1, 0 }
  0x14   : > { %s2397_s23 = scalar_select %p1949_p13, 1, 0 }
  0x15   : > { %p1540_p1 = pneg %p1949_p13  ;;  %s110_s25 = sshll.u32 %s1795_s24, 4  ;;  %s111_s25 = int_to_ptr.vmem [resolvable:$true] %s110_s25 }
  0x16   : > { %p1553_p2 = scmp.lt.s32.totalorder %s1793_s12, 8  ;;  %s121_s27 = sand.u32 1, %s1789_s11  }
  0x17   : > { %p1958_p0 = pnand %p1540_p1, %p2388_p4  ;;  %s1271_s29 = sshll.u32 %s121_s27, 4 }
  0x18   : > { %p1965_p3 = pnand %p1553_p2, %p1928_p5  ;;  %s1665_s4 = scalar_lea.hbm %s2385_s0, 128 }
  0x19   : > { %p1666_p7 = scmp.ne.s32.totalorder %s2385_s0, %s1665_s4  ;;  %p1667_p8 = pneg %p1958_p0 }
  0x1a   : > { %s2399_s28 = scalar_select %p1965_p3, 1, 0 }
  0x1b   : > { %p1668_p9 = pnand %p1667_p8, %p1666_p7  ;;  %p1672_p5 = scmp.lt.u32.totalorder %s1665_s4, %s2385_s0 }
  0x1d   : > { %p1669_p10 = pneg %p1668_p9 }
  0x1f   : > { %p1674_p1 = pnand %p1672_p5, %p1669_p10 }
  0x21   : > { %1677 = shalt.err (!%p1674_p1)
}
  0x22   : > { %s1678_s14 = scalar_lea.vmem %s111_s25, 128  ;;  %p1686_p11 = scmp.lt.s32.totalorder %s111_s25, %s111_s25 }
  0x23   : > { %p1679_p2 = scmp.ne.s32.totalorder %s111_s25, %s1678_s14  ;;  %p1687_p6 = scmp.lt.s32.totalorder %s1678_s14, %s1678_s14 }
  0x25   : > { %p1681_p4 = pnand %p1679_p2, %p1667_p8  ;;  %p1688_p13 = por %p1687_p6, %p1686_p11 }
  0x27   : > { %p1682_p12 = pneg %p1681_p4 }
  0x29   : > { %p1689_p3 = pnand %p1688_p13, %p1682_p12 }
  0x2b   : > { %1692 = shalt.err (!%p1689_p3)
}
  0x2c   : > { %1543 = dma.hbm_to_vmem [thread:$0]  (!%p1958_p0), %s2385_s0, 128, %s111_s25, [#allocation4]  }
  0x2d   : > { %s1282_s19 = sshll.u32 %s1793_s12, 8  ;;  %s125_s24 = scalar_lea.vmem [#allocation6], %s1271_s29 }
  0x2e   : > { %s132_s30 = sshll.u32 %s125_s24, 4  ;;  %s1989_s5 = scalar_lea.hbm %s2386_s1, %s1282_s19  ;;  %s1991_s30 = int_to_ptr.vmem [resolvable:$true] %s132_s30 }
  0x2f   : > { %s1993_s26 = scalar_lea.sflag [#allocation7], %s121_s27  ;;  %s1693_s6 = scalar_lea.hbm %s1989_s5, 256 }
  0x30   : > { %p1694_p4 = scmp.ne.s32.totalorder %s1989_s5, %s1693_s6  ;;  %p2400_p6 = scmp.ne.s32.totalorder %s2399_s28, 0 }
  0x31   : > { %s1698_s7 = scalar_lea.hbm %s2386_s1, 2048  ;;  %p1699_p0 = scmp.lt.u32.totalorder %s1989_s5, %s2386_s1 }
  0x32   : > { %p1695_p11 = pneg %p2400_p6  ;;  %p1700_p3 = scmp.lt.u32.totalorder %s1698_s7, %s1693_s6 }
  0x33   : > { %p1702_p8 = scmp.lt.u32.totalorder %s1693_s6, %s1989_s5 }
  0x34   : > { %p1696_p12 = pnand %p1695_p11, %p1694_p4  ;;  %p1701_p7 = por %p1700_p3, %p1699_p0 }
  0x36   : > { %p1697_p13 = pneg %p1696_p12  ;;  %p1703_p9 = por %p1702_p8, %p1701_p7 }
  0x38   : > { %p1704_p10 = pnand %p1703_p9, %p1697_p13 }
  0x3a   : > { %1707 = shalt.err (!%p1704_p10)
}
  0x3b   : > { %s1708_s27 = scalar_lea.vmem %s1991_s30, 256  ;;  %s1796_s16 = smov [#allocation6]  }
  0x3c   : > { %p1709_p5 = scmp.ne.s32.totalorder %s1991_s30, %s1708_s27  ;;  %s1713_s17 = sshll.u32 %s1796_s16, 4  ;;  %s1714_s17 = int_to_ptr.vmem [resolvable:$false] %s1713_s17 }
  0x3d   : > { %s1715_s19 = scalar_lea.vmem %s1714_s17, 512  ;;  %p1716_p4 = scmp.lt.s32.totalorder %s1991_s30, %s1714_s17 }
  0x3e   : > { %p1711_p1 = pnand %p1709_p5, %p1695_p11  ;;  %p1717_p12 = scmp.lt.s32.totalorder %s1715_s19, %s1708_s27 }
  0x40   : > { %p1712_p2 = pneg %p1711_p1  ;;  %p1718_p0 = por %p1717_p12, %p1716_p4 }
  0x42   : > { %p1719_p3 = pnand %p1718_p0, %p1712_p2 }
  0x44   : > { %1722 = shalt.err (!%p1719_p3)
}
  0x45   : > { %s1797_s24 = smov 128   ;;  %s1798_s3 = smov 8  }
  0x46   : > { %1547 = dma.hbm_to_vmem [thread:$0]  (!%p2400_p6), %s1989_s5, 256, %s1991_s30, %s1993_s26, %s1797_s24, %s1797_s24, %s1798_s3  }
  0x47   : > { %p2401_p11 = scmp.ne.s32.totalorder %s2397_s23, 0 }
  0x48   : > { %p2402_p13 = scmp.eq.s32.totalorder (!%p2401_p11), %s1910_s13, 0 }
  0x49   : > { %144 = sbr.rel (%p2401_p11) target bundleno = 617 (0x269), region = 28 }
  0x50   : > { %1768 = dma.done.wait (%p2402_p13), [#allocation4], 128   ;;  %p2403_p7 = pmov %p2402_p13 }
  0x51   : > { %s2028_s4 = sand.u32 1, %s1785_s10   ;;  %p2404_p6 = scmp.ne.s32.totalorder %s2394_s20, 0 }
  0x52   : > { %1770 = vsyncadd (%p2403_p7), [#allocation4], 4294967168  ;;  %s1276_s6 = sshll.u32 %s2028_s4, 4  ;;  %s151_s25 = scalar_lea.sflag [#allocation7], %s2028_s4 }
  0x53   : > { %s2032_s29 = scalar_lea.vmem [#allocation6], %s1276_s6 }
  0x54   : > { %1772 = dma.done.wait (%p2404_p6), %s151_s25, 256  }
  0x55   : > { %1774 = vsyncadd (%p2404_p6), %s151_s25, 4294967040  ;;  %v1799_v0 = vmov 0.0   ;;  %v2047_v1 = vld [vmem:[%s2032_s29 + $0x1] sm:$0xff]  ;;  %vm184_vm0 = vcmask 72704   ;;  %s1800_s20 = smov 8   ;;  %s1801_s23 = smov 127  }
  0x56   : > { %176 = vst [vmem:[#allocation2 + $0x8] sm:$0xff] %v1799_v0  ;;  %175 = vst [vmem:[#allocation2] sm:$0xff] %v1799_v0  ;;  %v2050_v2 = vld [vmem:[%s2032_s29] sm:$0xff]  ;;  %237 = vrot.lane.b32.xlu1 %v2047_v1, %s1800_s20  ;;  %s1802_s28 = smov 18   ;;  %s1803_s30 = smov 9   ;;  %v2099_v9 = vld [vmem:[%s2032_s29 + $0x8] sm:$0xff] }
  0x57   : > { %177 = vst [vmem:[#allocation2 + $0x10] sm:$0xff] %v1799_v0  ;;  %178 = vst [vmem:[#allocation2 + $0x18] sm:$0xff] %v1799_v0  ;;  %188 = vrot.lane.b32.xlu0 %v2050_v2, %s1801_s23  ;;  %v2057_v3 = vld [vmem:[%s2032_s29 + $0x2] sm:$0xff]  ;;  %s1804_s5 = smov 27   ;;  %s1805_s26 = smov 17   ;;  %v1828_v10 = vmov 0.0|0.0  }
  0x58   : > { %179 = vst [vmem:[#allocation2 + $0x20] sm:$0xff] %v1799_v0  ;;  %180 = vst [vmem:[#allocation2 + $0x28] sm:$0xff] %v1799_v0  ;;  %v2062_v4 = vld [vmem:[%s2032_s29 + $0x3] sm:$0xff]  ;;  %s1806_s7 = smov 126   ;;  %s1807_s8 = smov 26   ;;  %1451 = vmatprep.subr.bf16.mxu1 %v1828_v10  ;;  %1487 = vmatprep.subr.bf16.mxu0 %v1828_v10  ;;  %vm233_vm1 = vcmask 146504  }
  0x59   : > { %181 = vst [vmem:[#allocation2 + $0x30] sm:$0xff] %v1799_v0  ;;  %182 = vst [vmem:[#allocation2 + $0x38] sm:$0xff] %v1799_v0  ;;  %v2069_v5 = vld [vmem:[%s2032_s29 + $0x4] sm:$0xff]  ;;  %s1808_s14 = smov 36   ;;  %s1809_s27 = smov 125   ;;  %vm282_vm2 = vcmask 220304  }
  0x5a   : > { %185 = vst.msk [vmem:[#allocation2] sm:$0xff] %vm184_vm0, %v2050_v2  ;;  %279 = vrot.lane.b32.xlu1 %v2057_v3, %s1802_s28  ;;  %s1810_s16 = smov 7   ;;  %s1811_s17 = smov 35   ;;  %v2076_v6 = vld [vmem:[%s2032_s29 + $0x5] sm:$0xff]  ;;  %vm331_vm3 = vcmask 294104   ;;  %vm380_vm4 = vcmask 367904  }
  0x5b   : > { %230 = vrot.lane.b32.xlu0 %v2047_v1, %s1803_s30  ;;  %s1812_s19 = smov 45   ;;  %s1813_s24 = smov 6   ;;  %v2083_v7 = vld [vmem:[%s2032_s29 + $0x6] sm:$0xff]  ;;  %vm429_vm5 = vcmask 441704   ;;  %vm1872_vm6 = vmmov 0   ;;  %vm478_vm7 = vcmask 515504  }
  0x5c   : > { %s1814_s3 = smov 16   ;;  %s1815_s6 = smov 44   ;;  %v2090_v8 = vld [vmem:[%s2032_s29 + $0x7] sm:$0xff]  ;;  %1353 = vmatprep.mubr.msk.f32.mxu1 %vm1872_vm6, %v1799_v0  ;;  %1410 = vmatprep.mubr.msk.f32.mxu0 %vm1872_vm6, %v1799_v0  ;;  %vm527_vm8 = vcmask 589304   ;;  %vm576_vm9 = vcmask 663104   ;;  %vm629_vm10 = vcmask 523264  }
  0x5d   : > { %s1816_s25 = smov 54   ;;  %s1817_s20 = smov 15  }
  0x5e   : > { %328 = vrot.lane.b32.xlu1 %v2062_v4, %s1804_s5  ;;  %s1818_s23 = smov 25   ;;  %s1819_s28 = smov 53  }
  0x5f   : > { %286 = vrot.lane.b32.xlu0 %v2057_v3, %s1805_s26  ;;  %s1820_s30 = smov 63   ;;  %s1821_s5 = smov 24  }
  0x60   : > { %s1822_s26 = smov 124   ;;  %s1832_s29 = smov 4  }
  0x61   : > { %p2405_p9 = scmp.ne.s32.totalorder %s2395_s21, 0 }
  0x62   : > { %194 = vrot.lane.b32.xlu1 %v2050_v2, %s1806_s7  ;;  %s1823_s7 = smov 62  }
  0x63   : > { %335 = vrot.lane.b32.xlu0 %v2062_v4, %s1807_s8  ;;  %s1824_s8 = smov 34  }
  0x66   : > { %377 = vrot.lane.b32.xlu1 %v2069_v5, %s1808_s14  ;;  %s1825_s14 = smov 123  }
  0x67   : > { %200 = vrot.lane.b32.xlu0 %v2050_v2, %s1809_s27  ;;  %s1826_s27 = smov 72  }
  0x6a   : > { %243 = vrot.lane.b32.xlu1 %v2047_v1, %s1810_s16  ;;  %s1827_s16 = smov 33  }
  0x6b   : > { %384 = vrot.lane.b32.xlu0 %v2069_v5, %s1811_s17  ;;  %s1829_s17 = smov 5  }
  0x6e   : > { %426 = vrot.lane.b32.xlu1 %v2076_v6, %s1812_s19  ;;  %s1830_s19 = smov 71  }
  0x6f   : > { %249 = vrot.lane.b32.xlu0 %v2047_v1, %s1813_s24  ;;  %s1831_s24 = smov 43  }
  0x72   : > { %292 = vrot.lane.b32.xlu1 %v2057_v3, %s1814_s3  ;;  %s1833_s3 = smov 14  }
  0x73   : > { %433 = vrot.lane.b32.xlu0 %v2076_v6, %s1815_s6  ;;  %s1834_s6 = smov 42  }
  0x76   : > { %475 = vrot.lane.b32.xlu1 %v2083_v7, %s1816_s25  ;;  %s1835_s25 = smov 52  }
  0x77   : > { %298 = vrot.lane.b32.xlu0 %v2057_v3, %s1817_s20  ;;  %s1836_s20 = smov 13  }
  0x7a   : > { %341 = vrot.lane.b32.xlu1 %v2062_v4, %s1818_s23  ;;  %s1837_s23 = smov 23  }
  0x7b   : > { %482 = vrot.lane.b32.xlu0 %v2083_v7, %s1819_s28  ;;  %s1838_s28 = smov 51  }
  0x7e   : > { %524 = vrot.lane.b32.xlu1 %v2090_v8, %s1820_s30  ;;  %s1839_s30 = smov 61  }
  0x7f   : > { %347 = vrot.lane.b32.xlu0 %v2062_v4, %s1821_s5  ;;  %s1840_s5 = smov 22  }
  0x82   : > { %206 = vrot.lane.b32.xlu1 %v2050_v2, %s1822_s26  ;;  %s1841_s26 = smov 122  }
  0x83   : > { %531 = vrot.lane.b32.xlu0 %v2090_v8, %s1823_s7  ;;  %s1842_s7 = smov 60  }
  0x86   : > { %390 = vrot.lane.b32.xlu1 %v2069_v5, %s1824_s8  ;;  %s1843_s8 = smov 32  }
  0x87   : > { %212 = vrot.lane.b32.xlu0 %v2050_v2, %s1825_s14  ;;  %s1844_s14 = smov 121  }
  0x8a   : > { %573 = vrot.lane.b32.xlu1 %v2099_v9, %s1826_s27  ;;  %s1845_s27 = smov 70  }
  0x8b   : > { %396 = vrot.lane.b32.xlu0 %v2069_v5, %s1827_s16  ;;  %s1846_s16 = smov 31  }
  0x8e   : > { %255 = vrot.lane.b32.xlu1 %v2047_v1, %s1829_s17  ;;  %s1847_s17 = smov 3  }
  0x8f   : > { %580 = vrot.lane.b32.xlu0 %v2099_v9, %s1830_s19  ;;  %s1848_s19 = smov 69  }
  0x92   : > { %439 = vrot.lane.b32.xlu1 %v2076_v6, %s1831_s24  ;;  %s1849_s24 = smov 41  }
  0x93   : > { %261 = vrot.lane.b32.xlu0 %v2047_v1, %s1832_s29  ;;  %s1850_s29 = smov 2  }
  0x96   : > { %304 = vrot.lane.b32.xlu1 %v2057_v3, %s1833_s3  ;;  %s1851_s3 = smov 12  }
  0x97   : > { %445 = vrot.lane.b32.xlu0 %v2076_v6, %s1834_s6  ;;  %s1852_s6 = smov 40  }
  0x9a   : > { %488 = vrot.lane.b32.xlu1 %v2083_v7, %s1835_s25  ;;  %s1853_s25 = smov 50  }
  0x9b   : > { %310 = vrot.lane.b32.xlu0 %v2057_v3, %s1836_s20  ;;  %s1854_s20 = smov 11  }
  0x9e   : > { %353 = vrot.lane.b32.xlu1 %v2062_v4, %s1837_s23  ;;  %s1855_s23 = smov 21  }
  0x9f   : > { %494 = vrot.lane.b32.xlu0 %v2083_v7, %s1838_s28  ;;  %s1856_s28 = smov 49  }
  0xa2   : > { %537 = vrot.lane.b32.xlu1 %v2090_v8, %s1839_s30  ;;  %s1857_s30 = smov 59  }
  0xa3   : > { %359 = vrot.lane.b32.xlu0 %v2062_v4, %s1840_s5  ;;  %s1858_s5 = smov 20  }
  0xa6   : > { %218 = vrot.lane.b32.xlu1 %v2050_v2, %s1841_s26  ;;  %s1859_s26 = smov 30  }
  0xa7   : > { %543 = vrot.lane.b32.xlu0 %v2090_v8, %s1842_s7  ;;  %s1860_s7 = smov 58  }
  0xaa   : > { %402 = vrot.lane.b32.xlu1 %v2069_v5, %s1843_s8  ;;  %s1861_s8 = smov 68  }
  0xab   : > { %224 = vrot.lane.b32.xlu0 %v2050_v2, %s1844_s14  ;;  %s1862_s14 = smov 29  }
  0xae   : > { %586 = vrot.lane.b32.xlu1 %v2099_v9, %s1845_s27  ;;  %s1863_s27 = smov 39  }
  0xaf   : > { %408 = vrot.lane.b32.xlu0 %v2069_v5, %s1846_s16  ;;  %s1864_s16 = smov 67  }
  0xb2   : > { %267 = vrot.lane.b32.xlu1 %v2047_v1, %s1847_s17  ;;  %s1865_s17 = smov 48  }
  0xb3   : > { %592 = vrot.lane.b32.xlu0 %v2099_v9, %s1848_s19  ;;  %s1866_s19 = smov 38  }
  0xb6   : > { %451 = vrot.lane.b32.xlu1 %v2076_v6, %s1849_s24  ;;  %s1867_s24 = smov 57  }
  0xb7   : > { %273 = vrot.lane.b32.xlu0 %v2047_v1, %s1850_s29  ;;  %s1868_s29 = smov 47  }
  0xba   : > { %316 = vrot.lane.b32.xlu1 %v2057_v3, %s1851_s3  ;;  %s1869_s3 = smov 66  }
  0xbb   : > { %457 = vrot.lane.b32.xlu0 %v2076_v6, %s1852_s6  ;;  %s1870_s6 = smov 56  }
  0xbe   : > { %500 = vrot.lane.b32.xlu1 %v2083_v7, %s1853_s25  ;;  %s1871_s25 = smov 65  }
  0xbf   : > { %322 = vrot.lane.b32.xlu0 %v2057_v3, %s1854_s20  ;;  %s1277_s20 = sshll.u32 %s2028_s4, 3 }
  0xc2   : > { %365 = vrot.lane.b32.xlu1 %v2062_v4, %s1855_s23  ;;  %s1279_s23 = sshll.u32 %s1910_s13, 7 }
  0xc3   : > { %506 = vrot.lane.b32.xlu0 %v2083_v7, %s1856_s28  ;;  %s174_s28 = scalar_lea.vmem [#allocation8], %s1277_s20 }
  0xc6   : > { %549 = vrot.lane.b32.xlu1 %v2090_v8, %s1857_s30  ;;  %s1185_s30 = sshll.u32 %s174_s28, 4  ;;  %s2344_s30 = int_to_ptr.vmem [resolvable:$true] %s1185_s30 }
  0xc7   : > { %371 = vrot.lane.b32.xlu0 %v2062_v4, %s1858_s5  ;;  %s1723_s13 = scalar_lea.vmem %s2344_s30, 128 }
  0xc8   : > { %v238_v11 = vpop.permute.xlu1 %237  ;;  %p1724_p8 = scmp.ne.s32.totalorder %s2344_s30, %s1723_s13 }
  0xc9   : > { %v189_v12 = vpop.permute.xlu0 %188 }
  0xca   : > { %191 = vst.msk [vmem:[#allocation2 + $0x8] sm:$0xff] %vm184_vm0, %v189_v12  ;;  %414 = vrot.lane.b32.xlu1 %v2069_v5, %s1859_s26  ;;  %p1725_p10 = pnand %p1724_p8, %p2405_p9 }
  0xcb   : > { %555 = vrot.lane.b32.xlu0 %v2090_v8, %s1860_s7  ;;  %240 = vst.msk [vmem:[#allocation2 + $0x8] sm:$0xff] %vm233_vm1, %v238_v11  ;;  %s2342_s7 = scalar_lea.hbm %s2387_s2, %s1279_s23 }
  0xcc   : > { %v280_v13 = vpop.permute.xlu1 %279  ;;  %p1726_p5 = pneg %p1725_p10 }
  0xcd   : > { %v231_v14 = vpop.permute.xlu0 %230 }
  0xce   : > { %234 = vst.msk [vmem:[#allocation2] sm:$0xff] %vm233_vm1, %v231_v14  ;;  %598 = vrot.lane.b32.xlu1 %v2099_v9, %s1861_s8  ;;  %s1172_s8 = scalar_lea.sflag [#allocation5], %s2028_s4 }
  0xcf   : > { %420 = vrot.lane.b32.xlu0 %v2069_v5, %s1862_s14  ;;  %283 = vst.msk [vmem:[#allocation2] sm:$0xff] %vm282_vm2, %v280_v13  ;;  %s1873_s14 = smov [#allocation8]  }
  0xd0   : > { %v329_v15 = vpop.permute.xlu1 %328 }
  0xd1   : > { %v287_v16 = vpop.permute.xlu0 %286  ;;  %332 = vst.msk [vmem:[#allocation2] sm:$0xff] %vm331_vm3, %v329_v15 }
  0xd2   : > { %289 = vst.msk [vmem:[#allocation2 + $0x8] sm:$0xff] %vm282_vm2, %v287_v16  ;;  %463 = vrot.lane.b32.xlu1 %v2076_v6, %s1863_s27  ;;  %s1727_s27 = sshll.u32 %s1873_s14, 4  ;;  %s1728_s27 = int_to_ptr.vmem [resolvable:$false] %s1727_s27 }
  0xd3   : > { %604 = vrot.lane.b32.xlu0 %v2099_v9, %s1864_s16  ;;  %s1729_s16 = scalar_lea.vmem %s1728_s27, 256  ;;  %p1730_p1 = scmp.lt.s32.totalorder %s2344_s30, %s1728_s27 }
  0xd4   : > { %v195_v17 = vpop.permute.xlu1 %194  ;;  %p1731_p2 = scmp.lt.s32.totalorder %s1729_s16, %s1723_s13 }
  0xd5   : > { %v336_v18 = vpop.permute.xlu0 %335  ;;  %197 = vst.msk [vmem:[#allocation2 + $0x10] sm:$0xff] %vm184_vm0, %v195_v17 }
  0xd6   : > { %338 = vst.msk [vmem:[#allocation2 + $0x8] sm:$0xff] %vm331_vm3, %v336_v18  ;;  %512 = vrot.lane.b32.xlu1 %v2083_v7, %s1865_s17  ;;  %p1732_p4 = por %p1731_p2, %p1730_p1 }
  0xd7   : > { %469 = vrot.lane.b32.xlu0 %v2076_v6, %s1866_s19 }
  0xd8   : > { %v378_v19 = vpop.permute.xlu1 %377  ;;  %p1733_p12 = pnand %p1732_p4, %p1726_p5 }
  0xd9   : > { %v201_v20 = vpop.permute.xlu0 %200  ;;  %381 = vst.msk [vmem:[#allocation2] sm:$0xff] %vm380_vm4, %v378_v19 }
  0xda   : > { %203 = vst.msk [vmem:[#allocation2 + $0x18] sm:$0xff] %vm184_vm0, %v201_v20  ;;  %561 = vrot.lane.b32.xlu1 %v2090_v8, %s1867_s24 }
  0xdb   : > { %518 = vrot.lane.b32.xlu0 %v2083_v7, %s1868_s29 }
  0xdc   : > { %v244_v21 = vpop.permute.xlu1 %243 }
  0xdd   : > { %v385_v22 = vpop.permute.xlu0 %384  ;;  %246 = vst.msk [vmem:[#allocation2 + $0x10] sm:$0xff] %vm233_vm1, %v244_v21 }
  0xde   : > { %387 = vst.msk [vmem:[#allocation2 + $0x8] sm:$0xff] %vm380_vm4, %v385_v22  ;;  %610 = vrot.lane.b32.xlu1 %v2099_v9, %s1869_s3 }
  0xdf   : > { %567 = vrot.lane.b32.xlu0 %v2090_v8, %s1870_s6 }
  0xe0   : > { %v427_v23 = vpop.permute.xlu1 %426 }
  0xe1   : > { %v250_v24 = vpop.permute.xlu0 %249  ;;  %430 = vst.msk [vmem:[#allocation2] sm:$0xff] %vm429_vm5, %v427_v23 }
  0xe2   : > { %252 = vst.msk [vmem:[#allocation2 + $0x18] sm:$0xff] %vm233_vm1, %v250_v24 }
  0xe3   : > { %616 = vrot.lane.b32.xlu0 %v2099_v9, %s1871_s25 }
  0xe4   : > { %v293_v25 = vpop.permute.xlu1 %292 }
  0xe5   : > { %v434_v26 = vpop.permute.xlu0 %433  ;;  %295 = vst.msk [vmem:[#allocation2 + $0x10] sm:$0xff] %vm282_vm2, %v293_v25 }
  0xe6   : > { %436 = vst.msk [vmem:[#allocation2 + $0x8] sm:$0xff] %vm429_vm5, %v434_v26 }
  0xe8   : > { %v476_v27 = vpop.permute.xlu1 %475 }
  0xe9   : > { %v299_v28 = vpop.permute.xlu0 %298  ;;  %479 = vst.msk [vmem:[#allocation2] sm:$0xff] %vm478_vm7, %v476_v27 }
  0xea   : > { %301 = vst.msk [vmem:[#allocation2 + $0x18] sm:$0xff] %vm282_vm2, %v299_v28 }
  0xec   : > { %v342_v29 = vpop.permute.xlu1 %341 }
  0xed   : > { %v483_v30 = vpop.permute.xlu0 %482  ;;  %344 = vst.msk [vmem:[#allocation2 + $0x10] sm:$0xff] %vm331_vm3, %v342_v29 }
  0xee   : > { %485 = vst.msk [vmem:[#allocation2 + $0x8] sm:$0xff] %vm478_vm7, %v483_v30 }
  0xf0   : > { %v525_v31 = vpop.permute.xlu1 %524 }
  0xf1   : > { %v348_v32 = vpop.permute.xlu0 %347  ;;  %528 = vst.msk [vmem:[#allocation2] sm:$0xff] %vm527_vm8, %v525_v31 }
  0xf2   : > { %350 = vst.msk [vmem:[#allocation2 + $0x18] sm:$0xff] %vm331_vm3, %v348_v32 }
  0xf4   : > { %v207_v33 = vpop.permute.xlu1 %206 }
  0xf5   : > { %v532_v34 = vpop.permute.xlu0 %531  ;;  %209 = vst.msk [vmem:[#allocation2 + $0x20] sm:$0xff] %vm184_vm0, %v207_v33 }
  0xf6   : > { %534 = vst.msk [vmem:[#allocation2 + $0x8] sm:$0xff] %vm527_vm8, %v532_v34 }
  0xf8   : > { %v391_v35 = vpop.permute.xlu1 %390 }
  0xf9   : > { %v213_v36 = vpop.permute.xlu0 %212  ;;  %393 = vst.msk [vmem:[#allocation2 + $0x10] sm:$0xff] %vm380_vm4, %v391_v35 }
  0xfa   : > { %215 = vst.msk [vmem:[#allocation2 + $0x28] sm:$0xff] %vm184_vm0, %v213_v36 }
  0xfc   : > { %v574_v37 = vpop.permute.xlu1 %573 }
  0xfd   : > { %v397_v38 = vpop.permute.xlu0 %396  ;;  %577 = vst.msk [vmem:[#allocation2] sm:$0xff] %vm576_vm9, %v574_v37  ;;  %v620_v37 = vld [vmem:[#allocation3] sm:$0xff] }
  0xfe   : > { %399 = vst.msk [vmem:[#allocation2 + $0x18] sm:$0xff] %vm380_vm4, %v397_v38 }
 0x100   : > { %v256_v39 = vpop.permute.xlu1 %255 }
 0x101   : > { %v581_v40 = vpop.permute.xlu0 %580  ;;  %258 = vst.msk [vmem:[#allocation2 + $0x20] sm:$0xff] %vm233_vm1, %v256_v39 }
 0x102   : > { %583 = vst.msk [vmem:[#allocation2 + $0x8] sm:$0xff] %vm576_vm9, %v581_v40 }
 0x104   : > { %v440_v41 = vpop.permute.xlu1 %439  ;;  %v621_v43 = vld [vmem:[#allocation2] sm:$0xff] }
 0x105   : > { %v262_v42 = vpop.permute.xlu0 %261  ;;  %442 = vst.msk [vmem:[#allocation2 + $0x10] sm:$0xff] %vm429_vm5, %v440_v41  ;;  %v634_v44 = vand.u32 4294901760, %v621_v43 }
 0x106   : > { %264 = vst.msk [vmem:[#allocation2 + $0x28] sm:$0xff] %vm233_vm1, %v262_v42 }
 0x107   : > { %v2184_v45 = vsub.f32 %v621_v43, %v634_v44  ;;  %v631_v43 = vsel %vm629_vm10, %v620_v37, 0 }
 0x108   : > { %v305_v46 = vpop.permute.xlu1 %304 }
 0x109   : > { %v446_v47 = vpop.permute.xlu0 %445  ;;  %v622_v48 = vld [vmem:[#allocation2 + $0x8] sm:$0xff]  ;;  %307 = vst.msk [vmem:[#allocation2 + $0x20] sm:$0xff] %vm282_vm2, %v305_v46  ;;  %v719_v50 = vand.u32 4294901760, %v2184_v45 }
 0x10a   : > { %448 = vst.msk [vmem:[#allocation2 + $0x18] sm:$0xff] %vm429_vm5, %v446_v47  ;;  %v637_v49 = vand.u32 4294901760, %v622_v48 }
 0x10b   : > { %v720_v55 = vsub.f32 %v2184_v45, %v719_v50 }
 0x10c   : > { %v2189_v51 = vpack.c.bf16 %v637_v49, %v634_v44  ;;  %v2191_v52 = vsub.f32 %v622_v48, %v637_v49  ;;  %v489_v53 = vpop.permute.xlu1 %488  ;;  %v2251_v48 = vand.u32 4294901760, %v631_v43 }
 0x10d   : > { %v311_v54 = vpop.permute.xlu0 %310  ;;  %491 = vst.msk [vmem:[#allocation2 + $0x10] sm:$0xff] %vm478_vm7, %v489_v53  ;;  %v721_v62 = vand.u32 4294901760, %v720_v55 }
 0x10e   : > { %313 = vst.msk [vmem:[#allocation2 + $0x28] sm:$0xff] %vm282_vm2, %v311_v54  ;;  %1453 = vmatpush3.bf16.msra.mxu1 %v2189_v51  ;;  %1489 = vmatpush3.bf16.msra.mxu0 %v2189_v51  ;;  %v726_v56 = vand.u32 4294901760, %v2191_v52  ;;  %v1476_v57 = vpack.c.bf16 %v2191_v52, %v2184_v45 }
 0x10f   : > { %1454 = vmatprep.subr.bf16.mxu1 %v1828_v10  ;;  %1490 = vmatprep.subr.bf16.mxu0 %v1828_v10 }
 0x110   : > { %v727_v58 = vsub.f32 %v2191_v52, %v726_v56  ;;  %v2204_v59 = vpack.c.bf16 %v726_v56, %v719_v50  ;;  %v354_v60 = vpop.permute.xlu1 %353  ;;  %v2260_v50 = vsub.f32 %v631_v43, %v2251_v48 }
 0x111   : > { %v495_v61 = vpop.permute.xlu0 %494  ;;  %356 = vst.msk [vmem:[#allocation2 + $0x20] sm:$0xff] %vm331_vm3, %v354_v60 }
 0x112   : > { %497 = vst.msk [vmem:[#allocation2 + $0x18] sm:$0xff] %vm478_vm7, %v495_v61  ;;  %v728_v63 = vand.u32 4294901760, %v727_v58  ;;  %v708_v54 = vand.u32 4294901760, %v2260_v50 }
 0x114   : > { %v2208_v1 = vpack.c.bf16 %v728_v63, %v721_v62  ;;  %v538_v2 = vpop.permute.xlu1 %537  ;;  %v709_v62 = vsub.f32 %v2260_v50, %v708_v54 }
 0x115   : > { %v360_v3 = vpop.permute.xlu0 %359  ;;  %540 = vst.msk [vmem:[#allocation2 + $0x10] sm:$0xff] %vm527_vm8, %v538_v2 }
 0x116   : > { %362 = vst.msk [vmem:[#allocation2 + $0x28] sm:$0xff] %vm331_vm3, %v360_v3 }
 0x118   : > { %v219_v4 = vpop.permute.xlu1 %218 }
 0x119   : > { %v544_v5 = vpop.permute.xlu0 %543  ;;  %221 = vst.msk [vmem:[#allocation2 + $0x30] sm:$0xff] %vm184_vm0, %v219_v4 }
 0x11a   : > { %546 = vst.msk [vmem:[#allocation2 + $0x18] sm:$0xff] %vm527_vm8, %v544_v5 }
 0x11c   : > { %v403_v6 = vpop.permute.xlu1 %402 }
 0x11d   : > { %v225_v7 = vpop.permute.xlu0 %224  ;;  %405 = vst.msk [vmem:[#allocation2 + $0x20] sm:$0xff] %vm380_vm4, %v403_v6 }
 0x11e   : > { %227 = vst.msk [vmem:[#allocation2 + $0x38] sm:$0xff] %vm184_vm0, %v225_v7 }
 0x120   : > { %v587_v8 = vpop.permute.xlu1 %586 }
 0x121   : > { %v409_v9 = vpop.permute.xlu0 %408  ;;  %589 = vst.msk [vmem:[#allocation2 + $0x10] sm:$0xff] %vm576_vm9, %v587_v8 }
 0x122   : > { %411 = vst.msk [vmem:[#allocation2 + $0x28] sm:$0xff] %vm380_vm4, %v409_v9  ;;  %v710_v9 = vand.u32 4294901760, %v709_v62 }
 0x124   : > { %v268_v11 = vpop.permute.xlu1 %267 }
 0x125   : > { %v593_v12 = vpop.permute.xlu0 %592  ;;  %270 = vst.msk [vmem:[#allocation2 + $0x30] sm:$0xff] %vm233_vm1, %v268_v11 }
 0x126   : > { %595 = vst.msk [vmem:[#allocation2 + $0x18] sm:$0xff] %vm576_vm9, %v593_v12 }
 0x128   : > { %v452_v13 = vpop.permute.xlu1 %451  ;;  %v2222_v15 = vld [vmem:[#allocation2 + $0x10] sm:$0xff] }
 0x129   : > { %v274_v14 = vpop.permute.xlu0 %273  ;;  %454 = vst.msk [vmem:[#allocation2 + $0x20] sm:$0xff] %vm429_vm5, %v452_v13  ;;  %v640_v19 = vand.u32 4294901760, %v2222_v15 }
 0x12a   : > { %276 = vst.msk [vmem:[#allocation2 + $0x38] sm:$0xff] %vm233_vm1, %v274_v14 }
 0x12b   : > { %v2267_v55 = vsub.f32 %v2222_v15, %v640_v19 }
 0x12c   : > { %v317_v16 = vpop.permute.xlu1 %316 }
 0x12d   : > { %v458_v17 = vpop.permute.xlu0 %457  ;;  %v624_v18 = vld [vmem:[#allocation2 + $0x18] sm:$0xff]  ;;  %319 = vst.msk [vmem:[#allocation2 + $0x30] sm:$0xff] %vm282_vm2, %v317_v16  ;;  %v733_v4 = vand.u32 4294901760, %v2267_v55 }
 0x12e   : > { %460 = vst.msk [vmem:[#allocation2 + $0x28] sm:$0xff] %vm429_vm5, %v458_v17  ;;  %v643_v20 = vand.u32 4294901760, %v624_v18 }
 0x12f   : > { %v734_v12 = vsub.f32 %v2267_v55, %v733_v4 }
 0x130   : > { %v2227_v21 = vpack.c.bf16 %v643_v20, %v640_v19  ;;  %v501_v22 = vpop.permute.xlu1 %500  ;;  %v2263_v53 = vsub.f32 %v624_v18, %v643_v20 }
 0x131   : > { %v323_v23 = vpop.permute.xlu0 %322  ;;  %503 = vst.msk [vmem:[#allocation2 + $0x20] sm:$0xff] %vm478_vm7, %v501_v22  ;;  %v735_v17 = vand.u32 4294901760, %v734_v12 }
 0x132   : > { %325 = vst.msk [vmem:[#allocation2 + $0x38] sm:$0xff] %vm282_vm2, %v323_v23  ;;  %1456 = vmatpush3.bf16.msra.mxu1 %v2227_v21  ;;  %1492 = vmatpush3.bf16.msra.mxu0 %v2227_v21  ;;  %v740_v60 = vand.u32 4294901760, %v2263_v53 }
 0x133   : > { %1457 = vmatprep.subr.bf16.mxu1 %v1828_v10  ;;  %1493 = vmatprep.subr.bf16.mxu0 %v1828_v10 }
 0x134   : > { %v366_v24 = vpop.permute.xlu1 %365  ;;  %v741_v7 = vsub.f32 %v2263_v53, %v740_v60  ;;  %v1503_v22 = vpack.c.bf16 %v740_v60, %v733_v4 }
 0x135   : > { %v507_v25 = vpop.permute.xlu0 %506  ;;  %368 = vst.msk [vmem:[#allocation2 + $0x30] sm:$0xff] %vm331_vm3, %v366_v24 }
 0x136   : > { %509 = vst.msk [vmem:[#allocation2 + $0x28] sm:$0xff] %vm478_vm7, %v507_v25  ;;  %v742_v14 = vand.u32 4294901760, %v741_v7 }
 0x138   : > { %v550_v26 = vpop.permute.xlu1 %549  ;;  %v1467_v20 = vpack.c.bf16 %v742_v14, %v735_v17 }
 0x139   : > { %v372_v27 = vpop.permute.xlu0 %371  ;;  %552 = vst.msk [vmem:[#allocation2 + $0x20] sm:$0xff] %vm527_vm8, %v550_v26 }
 0x13a   : > { %374 = vst.msk [vmem:[#allocation2 + $0x38] sm:$0xff] %vm331_vm3, %v372_v27 }
 0x13c   : > { %v415_v28 = vpop.permute.xlu1 %414 }
 0x13d   : > { %v556_v29 = vpop.permute.xlu0 %555  ;;  %417 = vst.msk [vmem:[#allocation2 + $0x30] sm:$0xff] %vm380_vm4, %v415_v28 }
 0x13e   : > { %558 = vst.msk [vmem:[#allocation2 + $0x28] sm:$0xff] %vm527_vm8, %v556_v29 }
 0x140   : > { %v599_v30 = vpop.permute.xlu1 %598 }
 0x141   : > { %v421_v31 = vpop.permute.xlu0 %420  ;;  %601 = vst.msk [vmem:[#allocation2 + $0x20] sm:$0xff] %vm576_vm9, %v599_v30 }
 0x142   : > { %423 = vst.msk [vmem:[#allocation2 + $0x38] sm:$0xff] %vm380_vm4, %v421_v31  ;;  %v1479_v31 = vpack.c.bf16 %v2263_v53, %v2267_v55 }
 0x144   : > { %v464_v32 = vpop.permute.xlu1 %463 }
 0x145   : > { %v605_v33 = vpop.permute.xlu0 %604  ;;  %466 = vst.msk [vmem:[#allocation2 + $0x30] sm:$0xff] %vm429_vm5, %v464_v32 }
 0x146   : > { %607 = vst.msk [vmem:[#allocation2 + $0x28] sm:$0xff] %vm576_vm9, %v605_v33 }
 0x148   : > { %v513_v34 = vpop.permute.xlu1 %512  ;;  %v625_v36 = vld [vmem:[#allocation2 + $0x20] sm:$0xff] }
 0x149   : > { %v470_v35 = vpop.permute.xlu0 %469  ;;  %515 = vst.msk [vmem:[#allocation2 + $0x30] sm:$0xff] %vm478_vm7, %v513_v34  ;;  %v646_v41 = vand.u32 4294901760, %v625_v36 }
 0x14a   : > { %472 = vst.msk [vmem:[#allocation2 + $0x38] sm:$0xff] %vm429_vm5, %v470_v35 }
 0x14b   : > { %v2273_v63 = vsub.f32 %v625_v36, %v646_v41 }
 0x14c   : > { %v562_v38 = vpop.permute.xlu1 %561 }
 0x14d   : > { %v519_v39 = vpop.permute.xlu0 %518  ;;  %v626_v40 = vld [vmem:[#allocation2 + $0x28] sm:$0xff]  ;;  %564 = vst.msk [vmem:[#allocation2 + $0x30] sm:$0xff] %vm527_vm8, %v562_v38  ;;  %v747_v13 = vand.u32 4294901760, %v2273_v63 }
 0x14e   : > { %521 = vst.msk [vmem:[#allocation2 + $0x38] sm:$0xff] %vm478_vm7, %v519_v39  ;;  %v649_v42 = vand.u32 4294901760, %v626_v40 }
 0x14f   : > { %v748_v18 = vsub.f32 %v2273_v63, %v747_v13 }
 0x150   : > { %v2249_v44 = vpack.c.bf16 %v649_v42, %v646_v41  ;;  %v611_v46 = vpop.permute.xlu1 %610  ;;  %v2269_v58 = vsub.f32 %v626_v40, %v649_v42 }
 0x151   : > { %v568_v47 = vpop.permute.xlu0 %567  ;;  %613 = vst.msk [vmem:[#allocation2 + $0x30] sm:$0xff] %vm576_vm9, %v611_v46 }
 0x152   : > { %570 = vst.msk [vmem:[#allocation2 + $0x38] sm:$0xff] %vm527_vm8, %v568_v47  ;;  %1459 = vmatpush3.bf16.msra.mxu1 %v2249_v44  ;;  %1495 = vmatpush3.bf16.msra.mxu0 %v2249_v44  ;;  %v754_v8 = vand.u32 4294901760, %v2269_v58  ;;  %v1482_v45 = vpack.c.bf16 %v2269_v58, %v2273_v63 }
 0x153   : > { %1460 = vmatprep.subr.bf16.mxu1 %v1828_v10  ;;  %1496 = vmatprep.subr.bf16.mxu0 %v1828_v10 }
 0x154   : > { %v755_v15 = vsub.f32 %v2269_v58, %v754_v8  ;;  %v1506_v26 = vpack.c.bf16 %v754_v8, %v747_v13 }
 0x155   : > { %v617_v49 = vpop.permute.xlu0 %616 }
 0x156   : > { %619 = vst.msk [vmem:[#allocation2 + $0x38] sm:$0xff] %vm576_vm9, %v617_v49  ;;  %v756_v23 = vand.u32 4294901760, %v755_v15 }
 0x158   : > { %v627_v56 = vld [vmem:[#allocation2 + $0x30] sm:$0xff] }
 0x159   : > { %v652_v2 = vand.u32 4294901760, %v627_v56 }
 0x15b   : > { %v2283_v11 = vsub.f32 %v627_v56, %v652_v2 }
 0x15d   : > { %v628_v61 = vld [vmem:[#allocation2 + $0x38] sm:$0xff]  ;;  %v761_v19 = vand.u32 4294901760, %v2283_v11 }
 0x15e   : > { %v655_v3 = vand.u32 4294901760, %v628_v61 }
 0x160   : > { %v2276_v5 = vpack.c.bf16 %v655_v3, %v652_v2  ;;  %v2278_v6 = vsub.f32 %v628_v61, %v655_v3 }
 0x162   : > { %1462 = vmatpush3.bf16.msra.mxu1 %v2276_v5  ;;  %1498 = vmatpush3.bf16.msra.mxu0 %v2276_v5  ;;  %v768_v16 = vand.u32 4294901760, %v2278_v6 }
 0x163   : > { %1463 = vmatprep.subr.bf16.mxu1 %v1828_v10  ;;  %1499 = vmatprep.subr.bf16.mxu0 %v1828_v10 }
 0x164   : > { %v769_v24 = vsub.f32 %v2278_v6, %v768_v16  ;;  %v1509_v30 = vpack.c.bf16 %v768_v16, %v761_v19 }
 0x165   : > { %1354 = vmatmul.mubr.f32.vlgmr.msra.gmra.mrb[0].mxu1 %v710_v9  ;;  %1411 = vmatmul.mubr.f32.vlgmr.msra.gmra.mrb[0].mxu0 %v708_v54 }
 0x166   : > { %1465 = vmatpush3.bf16.msra.mxu1 %v2208_v1  ;;  %1501 = vmatpush3.bf16.msra.mxu0 %v2204_v59  ;;  %v749_v59 = vand.u32 4294901760, %v748_v18  ;;  %v762_v1 = vsub.f32 %v2283_v11, %v761_v19  ;;  %v770_v27 = vand.u32 4294901760, %v769_v24 }
 0x167   : > { %1466 = vmatprep.subr.bf16.mxu1 %v1828_v10  ;;  %1502 = vmatprep.subr.bf16.mxu0 %v1828_v10 }
 0x168   : > { %1372 = vmatprep.mubr.msk.f32.mxu1 %vm1872_vm6, %v1799_v0  ;;  %1429 = vmatprep.mubr.msk.f32.mxu0 %vm1872_vm6, %v1799_v0  ;;  %v1470_v25 = vpack.c.bf16 %v756_v23, %v749_v59  ;;  %v763_v28 = vand.u32 4294901760, %v762_v1 }
 0x16a   : > { %1468 = vmatpush3.bf16.msra.mxu1 %v1467_v20  ;;  %1504 = vmatpush3.bf16.msra.mxu0 %v1503_v22  ;;  %v1473_v29 = vpack.c.bf16 %v770_v27, %v763_v28 }
 0x16b   : > { %1469 = vmatprep.subr.bf16.mxu1 %v1828_v10  ;;  %1505 = vmatprep.subr.bf16.mxu0 %v1828_v10 }
 0x16e   : > { %1471 = vmatpush3.bf16.msra.mxu1 %v1470_v25  ;;  %1507 = vmatpush3.bf16.msra.mxu0 %v1506_v26 }
 0x16f   : > { %1472 = vmatprep.subr.bf16.mxu1 %v1828_v10  ;;  %1508 = vmatprep.subr.bf16.mxu0 %v1828_v10 }
 0x172   : > { %1474 = vmatpush3.bf16.msra.mxu1 %v1473_v29  ;;  %1510 = vmatpush3.bf16.msra.mxu0 %v1509_v30 }
 0x173   : > { %1475 = vmatprep.subr.bf16.mxu1 %v1828_v10  ;;  %1511 = vmatprep.subr.bf16.mxu0 %v1828_v10 }
 0x175   : > { %1373 = vmatmul.mubr.f32.vlgmr.msra.gmra.mrb[0].mxu1 %v2251_v48  ;;  %1430 = vmatmul.mubr.f32.vlgmr.msra.gmra.mrb[0].mxu0 %v2251_v48 }
 0x176   : > { %1477 = vmatpush3.bf16.msra.mxu1 %v1476_v57  ;;  %1513 = vmatpush3.bf16.msra.mxu0 %v2189_v51 }
 0x177   : > { %1478 = vmatprep.subr.bf16.mxu1 %v1828_v10  ;;  %1514 = vmatprep.subr.bf16.mxu0 %v1828_v10 }
 0x178   : > { %1391 = vmatprep.mubr.msk.f32.mxu1 %vm1872_vm6, %v1799_v0  ;;  %1448 = vmatprep.mubr.msk.f32.mxu0 %vm1872_vm6, %v1799_v0  ;;  %v1485_v0 = vpack.c.bf16 %v2278_v6, %v2283_v11 }
 0x17a   : > { %1480 = vmatpush3.bf16.msra.mxu1 %v1479_v31  ;;  %1516 = vmatpush3.bf16.msra.mxu0 %v2227_v21 }
 0x17b   : > { %1481 = vmatprep.subr.bf16.mxu1 %v1828_v10  ;;  %1517 = vmatprep.subr.bf16.mxu0 %v1828_v10 }
 0x17e   : > { %1483 = vmatpush3.bf16.msra.mxu1 %v1482_v45  ;;  %1519 = vmatpush3.bf16.msra.mxu0 %v2249_v44 }
 0x17f   : > { %1484 = vmatprep.subr.bf16.mxu1 %v1828_v10  ;;  %1520 = vmatprep.subr.bf16.mxu0 %v1828_v10 }
 0x182   : > { %1486 = vmatpush3.bf16.msra.mxu1 %v1485_v0  ;;  %1522 = vmatpush3.bf16.msra.mxu0 %v2276_v5 }
 0x185   : > { %1392 = vmatmul.mubr.f32.vlgmr.msra.gmra.mrb[0].mxu1 %v2260_v50  ;;  %1449 = vmatmul.mubr.f32.vlgmr.msra.gmra.mrb[0].mxu0 %v2251_v48 }
 0x258   : > { %v911_v51 = vpop.f32.mrb[0].mxu1  ;;  %v1166_v52 = vpop.f32.mrb[0].mxu0 }
 0x259   : > { %v1523_v57 = vadd.f32 %v1166_v52, %v911_v51  ;;  %v1393_v10 = vpop.f32.mrb[1].mxu1  ;;  %v1450_v21 = vpop.f32.mrb[1].mxu0 }
 0x25b   : > { %1170 = vst [vmem:[%s174_s28] sm:$0xff] %v1523_v57 }
 0x25c   : > { %1736 = shalt.err (!%p1733_p12)
}
 0x25d   : > { %s1737_s4 = scalar_lea.hbm %s2342_s7, 128  ;;  %s1741_s24 = scalar_lea.hbm %s2387_s2, 1024 }
 0x25e   : > { %p1738_p0 = scmp.ne.s32.totalorder %s2342_s7, %s1737_s4  ;;  %p1742_p13 = scmp.lt.u32.totalorder %s2342_s7, %s2387_s2 }
 0x25f   : > { %p1743_p7 = scmp.lt.u32.totalorder %s1741_s24, %s1737_s4  ;;  %p1745_p8 = scmp.lt.u32.totalorder %s1737_s4, %s2342_s7 }
 0x260   : > { %p1739_p3 = pnand %p1738_p0, %p2405_p9 }
 0x261   : > { %p1744_p6 = por %p1743_p7, %p1742_p13 }
 0x262   : > { %p1740_p11 = pneg %p1739_p3 }
 0x263   : > { %p1746_p10 = por %p1745_p8, %p1744_p6 }
 0x265   : > { %p1747_p5 = pnand %p1746_p10, %p1740_p11 }
 0x267   : > { %1750 = shalt.err (!%p1747_p5)
}
 0x268   : > { %1538 = dma.vmem_to_hbm [thread:$0]  (%p2405_p9), %s2344_s30, 128, %s2342_s7, %s1172_s8  }
 0x269 PF: > { %p1555_p1 = scmp.ge.s32.totalorder %s1793_s12, 2  ;;  %s1197_s6 = sand.u32 1, %s1781_s9  }
 0x26a   : > { %p2406_p2 = scmp.ne.s32.totalorder %s2396_s22, 0  ;;  %s1198_s25 = scalar_lea.sflag [#allocation5], %s1197_s6 }
 0x26c   : > { %p1549_p4 = pnand %p1555_p1, %p2406_p2 }
 0x26e   : > { %1776 = dma.done.wait (!%p1549_p4), %s1198_s25, 128  }
 0x26f   : > { %1778 = vsyncadd (!%p1549_p4), %s1198_s25, 4294967168  ;;  %p16_p12 = scmp.ge.s32.totalorder %s1914_s15, 10   ;;  %s2407_s9 = smov %s1785_s10 }
 0x270   : > { %s2408_s10 = smov %s1789_s11  ;;  %s2409_s11 = smov %s1926_s18 }
 0x271   : > { %s2410_s12 = smov %s1914_s15  ;;  %18 = sbr.rel (!%p16_p12) target bundleno = 6 (0x6), region = 78 }
 0x278   :  { %1203 = vsyncpa [#allocation4], 1 }
 0x279   :  { %1205 = vsyncpa [#allocation4 + $0x1], 1 }
 0x27a   :  { %1206 = vsyncpa [#allocation7], 1 }
 0x27b   :  { %1208 = vsyncpa [#allocation7 + $0x1], 1 }
 0x27c   :  { %1209 = vsyncpa [#allocation5], 1 }
 0x27d   :  { %1211 = vsyncpa [#allocation5 + $0x1], 1 }

</bundles_post_ra>
